<compile_context>
chip_gen: v7x
topology: tpu7x:2x2x1
jax: 0.10.0
libtpu: 0.0.40
codegen_flags: <defaults>
</compile_context>

<pallas_src>
import functools

import jax
import jax.numpy as jnp
from jax.experimental import pallas as pl
from jax.experimental.pallas import tpu as pltpu

# Fits every generation: > v5e's 16 MiB scoped default, < v7x's 64 MiB physical.
_VMEM_LIMIT = 48 * 1024 * 1024


# ------------------------------ tiling helpers ------------------------------

def _tile(dim, pref, mult):
    """Largest tile <= pref that divides `dim` and is a multiple of `mult`;
    falls back to the full extent (always layout-legal)."""
    if dim <= pref:
        return dim
    t = (pref // mult) * mult
    while t >= mult:
        if dim % t == 0:
            return t
        t -= mult
    return dim


def _tile_rows(M, pref):
    """Row tile (multiple of 8).  Capped at M//2 so the 'parallel' m axis has at
    least 2 steps whenever possible (keeps both v7x TensorCores busy)."""
    cap = max(8, (M // 2) // 8 * 8)
    return _tile(M, min(pref, cap), 8)


def _pick_seq_block(B, S):
    """# sequences per attention grid step.  rows = nb*S must be %8==0 (or full);
    nb <= B//2 so the parallel grid axis has >= 2 steps (v7x dual TC)."""
    best = None
    for cand in range(1, max(1, B // 2) + 1):
        if B % cand:
            continue
        if (cand * S) % 8 == 0 and cand * S <= 512:
            best = cand
    if best is None:
        for cand in range(1, B + 1):
            if B % cand == 0 and (cand * S) % 8 == 0:
                best = cand
                break
        else:
            best = B          # full slab (always layout-legal)
    return best


def _pick_chunk(D, hd):
    """Column-chunk width for attention: a 128-lane multiple covering whole heads
    when possible, else the full feature dim (small-model fallback)."""
    if D % 128 == 0 and 128 % hd == 0:
        return 128
    if hd % 128 == 0:
        return hd
    return D


# ------------------------------ linear kernels ------------------------------

def _matmul_bias_kernel(x_ref, w_ref, b_ref, o_ref, acc_ref, *, relu):
    @pl.when(pl.program_id(2) == 0)
    def _init():
        acc_ref[...] = jnp.zeros_like(acc_ref)

    acc_ref[...] += jnp.dot(x_ref[...], w_ref[...],
                            preferred_element_type=jnp.float32)

    @pl.when(pl.program_id(2) == pl.num_programs(2) - 1)
    def _epilogue():
        y = acc_ref[...] + b_ref[...]
        if relu:
            y = jnp.maximum(y, 0.0)
        o_ref[...] = y.astype(o_ref.dtype)


def linear(x, w, b, *, relu=False, out_dtype=None, tn_pref=1024):
    """x: (M, K); w: (K, N) pre-transposed bf16; b: (1, N) f32. Returns (M, N)."""
    M, K = x.shape
    K2, N = w.shape
    assert K == K2
    out_dtype = out_dtype or x.dtype
    tm = _tile_rows(M, 512)
    tn = _tile(N, tn_pref, 128)
    tk = _tile(K, 1024, 128)
    grid = (M // tm, N // tn, K // tk)
    return pl.pallas_call(
        functools.partial(_matmul_bias_kernel, relu=relu),
        grid=grid,
        in_specs=[
            pl.BlockSpec((tm, tk), lambda i, j, k: (i, k)),
            pl.BlockSpec((tk, tn), lambda i, j, k: (k, j)),
            pl.BlockSpec((1, tn), lambda i, j, k: (0, j)),
        ],
        out_specs=pl.BlockSpec((tm, tn), lambda i, j, k: (i, j)),
        out_shape=jax.ShapeDtypeStruct((M, N), out_dtype),
        scratch_shapes=[pltpu.VMEM((tm, tn), jnp.float32)],
        compiler_params=pltpu.CompilerParams(
            dimension_semantics=("parallel", "parallel", "arbitrary"),
            vmem_limit_bytes=_VMEM_LIMIT),
    )(x, w, b)


def _matmul_res_ln_kernel(x_ref, w_ref, b_ref, r_ref, g_ref, bt_ref,
                          o_ref, acc_ref, *, eps, feat):
    @pl.when(pl.program_id(1) == 0)
    def _init():
        acc_ref[...] = jnp.zeros_like(acc_ref)

    acc_ref[...] += jnp.dot(x_ref[...], w_ref[...],
                            preferred_element_type=jnp.float32)

    @pl.when(pl.program_id(1) == pl.num_programs(1) - 1)
    def _epilogue():
        # fused: bias + residual add + LayerNorm (unbiased variance, as torch.var)
        y = acc_ref[...] + b_ref[...] + r_ref[...].astype(jnp.float32)
        mean = jnp.mean(y, axis=-1, keepdims=True)
        diff = y - mean
        # `feat` is the true model dim (passed statically), not the tile width.
        var = jnp.sum(diff * diff, axis=-1, keepdims=True) * (1.0 / (feat - 1))
        inv = jax.lax.rsqrt(var + eps)
        o_ref[...] = (g_ref[...] * diff * inv + bt_ref[...]).astype(o_ref.dtype)


def linear_residual_layernorm(x, w, b, resid, gamma, beta, *, eps=1e-5, out_dtype=None):
    """LayerNorm(x @ w + b + resid).  Requires full-N output tiles (LN over last dim)."""
    M, K = x.shape
    K2, N = w.shape
    assert K == K2 and resid.shape == (M, N)
    out_dtype = out_dtype or resid.dtype
    # v7x 64 MiB budget: shrink row/K tiles when N (=model dim) is wide.
    tm = _tile_rows(M, 256 if N <= 4096 else 128)
    tk = _tile(K, 512 if N <= 4096 else 256, 128)
    grid = (M // tm, K // tk)
    return pl.pallas_call(
        functools.partial(_matmul_res_ln_kernel, eps=eps, feat=N),
        grid=grid,
        in_specs=[
            pl.BlockSpec((tm, tk), lambda i, k: (i, k)),
            pl.BlockSpec((tk, N), lambda i, k: (k, 0)),
            pl.BlockSpec((1, N), lambda i, k: (0, 0)),
            pl.BlockSpec((tm, N), lambda i, k: (i, 0)),
            pl.BlockSpec((1, N), lambda i, k: (0, 0)),
            pl.BlockSpec((1, N), lambda i, k: (0, 0)),
        ],
        out_specs=pl.BlockSpec((tm, N), lambda i, k: (i, 0)),
        out_shape=jax.ShapeDtypeStruct((M, N), out_dtype),
        scratch_shapes=[pltpu.VMEM((tm, N), jnp.float32)],
        compiler_params=pltpu.CompilerParams(
            dimension_semantics=("parallel", "arbitrary"),
            vmem_limit_bytes=_VMEM_LIMIT),
    )(x, w, b, resid, gamma, beta)


def _ln_kernel(x_ref, g_ref, b_ref, o_ref, *, eps, feat):
    x = x_ref[...].astype(jnp.float32)
    mean = jnp.mean(x, axis=-1, keepdims=True)
    diff = x - mean
    var = jnp.sum(diff * diff, axis=-1, keepdims=True) * (1.0 / (feat - 1))
    inv = jax.lax.rsqrt(var + eps)
    o_ref[...] = (g_ref[...] * diff * inv + b_ref[...]).astype(o_ref.dtype)


def layernorm(x, gamma, beta, *, eps=1e-5, out_dtype=None):
    M, D = x.shape
    out_dtype = out_dtype or x.dtype
    tm = _tile_rows(M, 512)
    return pl.pallas_call(
        functools.partial(_ln_kernel, eps=eps, feat=D),
        grid=(M // tm,),
        in_specs=[pl.BlockSpec((tm, D), lambda i: (i, 0)),
                  pl.BlockSpec((1, D), lambda i: (0, 0)),
                  pl.BlockSpec((1, D), lambda i: (0, 0))],
        out_specs=pl.BlockSpec((tm, D), lambda i: (i, 0)),
        out_shape=jax.ShapeDtypeStruct((M, D), out_dtype),
        compiler_params=pltpu.CompilerParams(
            dimension_semantics=("parallel",), vmem_limit_bytes=_VMEM_LIMIT),
    )(x, gamma, beta)


# ---------------------------- attention kernel ------------------------------

def _attn_kernel(qkv_ref, o_ref, *, nb, S, H, hd, cw, scale):
    """One grid step handles `nb` whole sequences of the fused (q|k|v) slab.

    For each sequence b and slot z (valid only because H == S, see header), the
    buggy torch MHA reduces to attention over the hd-wide column slice z of the
    per-sequence q/k/v 2-D projections, with the causal tril mask applied over
    (slot-row h, key j); results go to the same column slice of the output.

    Heads are processed in `cw`-lane chunks: the chunk is loaded once from the
    ref (static, lane-aligned offsets -> no whole-slab value, no masked loads
    when D%128==0), per-head slicing happens on the in-vreg chunk value, and the
    chunk's head outputs are concatenated into a single lane-dense store."""
    D = H * hd
    hpc = cw // hd          # heads per chunk
    nc = D // cw            # chunks per sequence
    # causal mask, hoisted (broadcast/iota are not CSE'd if left inside loops)
    rowi = jax.lax.broadcasted_iota(jnp.int32, (S, S), 0)
    coli = jax.lax.broadcasted_iota(jnp.int32, (S, S), 1)
    causal = coli <= rowi
    for b in range(nb):                       # nb is small (usually 1)
        r0 = b * S
        for c in range(nc):                   # static: lane offsets must be constants
            col = c * cw
            qc = qkv_ref[r0:r0 + S, col:col + cw]                    # (S, cw) ref load
            kc = qkv_ref[r0:r0 + S, D + col:D + col + cw]
            vc = qkv_ref[r0:r0 + S, 2 * D + col:2 * D + col + cw]
            outs = []
            for zz in range(hpc):             # slice the small in-vreg chunk per head
                lo, hi = zz * hd, (zz + 1) * hd
                q_h, k_h, v_h = qc[:, lo:hi], kc[:, lo:hi], vc[:, lo:hi]
                s = jax.lax.dot_general(
                    q_h, k_h, (((1,), (1,)), ((), ())),
                    preferred_element_type=jnp.float32) * scale      # bug: 1/hd scale
                s = jnp.where(causal, s, float("-inf"))
                m = jnp.max(s, axis=-1, keepdims=True)
                e = jnp.exp(s - m)
                p = e / jnp.sum(e, axis=-1, keepdims=True)           # exact reciprocal
                outs.append(jnp.dot(p.astype(v_h.dtype), v_h,
                                    preferred_element_type=jnp.float32))
            oc = outs[0] if hpc == 1 else jnp.concatenate(outs, axis=-1)
            # one lane-dense store per chunk (instead of hpc masked hd-wide stores)
            o_ref[r0:r0 + S, col:col + cw] = oc.astype(o_ref.dtype)


def attention(qkv, *, B, S, H, hd, scale):
    D = H * hd
    M = B * S
    nb = _pick_seq_block(B, S)
    rows = nb * S
    cw = _pick_chunk(D, hd)
    return pl.pallas_call(
        functools.partial(_attn_kernel, nb=nb, S=S, H=H, hd=hd, cw=cw, scale=scale),
        grid=(B // nb,),
        in_specs=[pl.BlockSpec((rows, 3 * D), lambda g: (g, 0))],
        out_specs=pl.BlockSpec((rows, D), lambda g: (g, 0)),
        out_shape=jax.ShapeDtypeStruct((M, D), qkv.dtype),
        compiler_params=pltpu.CompilerParams(
            dimension_semantics=("parallel",), vmem_limit_bytes=_VMEM_LIMIT),
    )(qkv)


# ------------------------------ model wrapper --------------------------------

def init_params(key, num_layers, num_heads, ffn_dim, dim, vocab_size, block_size,
                compute_dtype=jnp.bfloat16):
    keys = iter(jax.random.split(key, 3 + num_layers * 4))

    def w(in_dim, out_dim, std=0.2):
        # stored pre-transposed (in, out) and in bf16: no per-call w.T, full-rate MXU
        return (jax.random.normal(next(keys), (in_dim, out_dim), jnp.float32)
                * std).astype(compute_dtype)

    def zeros(n):
        return jnp.zeros((1, n), jnp.float32)

    def ones(n):
        return jnp.ones((1, n), jnp.float32)

    params = {
        "tok_emb": jax.random.normal(next(keys), (vocab_size, dim), jnp.float32) * 0.02,
        "pos_emb": jax.random.normal(next(keys), (block_size, dim), jnp.float32) * 0.02,
        "lm_head_w": w(dim, vocab_size),
        "lm_head_b": zeros(vocab_size),
        "final_ln_g": ones(dim),
        "final_ln_b": zeros(dim),
        "layers": [],
    }
    for _ in range(num_layers):
        params["layers"].append({
            "wqkv": w(dim, 3 * dim), "bqkv": zeros(3 * dim),     # fused q|k|v
            "wo": w(dim, dim), "bo": zeros(dim),
            "attn_ln_g": ones(dim), "attn_ln_b": zeros(dim),
            "w1": w(dim, ffn_dim), "b1": zeros(ffn_dim),
            "w2": w(ffn_dim, dim), "b2": zeros(dim),
            "ffn_ln_g": ones(dim), "ffn_ln_b": zeros(dim),
        })
    return params


def forward(params, idx, *, num_heads):
    """idx: (B, S) int32 -> logits (B, S, vocab). Dropout layers are identity."""
    B, S = idx.shape
    D = params["tok_emb"].shape[1]
    block_size = params["pos_emb"].shape[0]
    H = num_heads
    assert D % H == 0
    hd = D // H
    assert H == S, "buggy MHA reshape/broadcast requires num_heads == seq_len"
    # torch would index position S out of range otherwise (positions start at 1)
    assert block_size >= S + 1, "position embedding needs block_size >= seq_len + 1"
    cdt = params["lm_head_w"].dtype                     # bf16 compute dtype

    tok = params["tok_emb"][idx]                        # (B, S, D) gather (XLA glue)
    pos = params["pos_emb"][1:S + 1]                    # bug: positions start at 1
    x2d = (tok + pos[None, :, :]).astype(cdt).reshape(B * S, D)   # dropout == identity

    scale = 1.0 / hd                                    # bug: no sqrt
    for lp in params["layers"]:
        qkv = linear(x2d, lp["wqkv"], lp["bqkv"])                       # (M, 3D)
        attn = attention(qkv, B=B, S=S, H=H, hd=hd, scale=scale)        # (M, D)
        # out_proj + bias + residual + attn LayerNorm, fused epilogue
        x2d = linear_residual_layernorm(attn, lp["wo"], lp["bo"], x2d,
                                        lp["attn_ln_g"], lp["attn_ln_b"])
        h1 = linear(x2d, lp["w1"], lp["b1"], relu=True)                 # (M, F)
        # fc2 + bias + residual + ffn LayerNorm, fused epilogue
        x2d = linear_residual_layernorm(h1, lp["w2"], lp["b2"], x2d,
                                        lp["ffn_ln_g"], lp["ffn_ln_b"])

    xf = layernorm(x2d, params["final_ln_g"], params["final_ln_b"])     # final norm
    logits = linear(xf, params["lm_head_w"], params["lm_head_b"],
                    out_dtype=jnp.float32, tn_pref=2048)                # wide-N tiles
    # TODO(synk): targets/cross-entropy-loss path omitted (targets=None case only)
    return logits.reshape(B, S, -1)


if __name__ == "__main__":
    num_layers, num_heads, ffn_dim, dim = 2, 8, 64, 32
    vocab_size, block_size = 64, 16
    B, S = 2, 8   # seq_len must equal num_heads for the reference forward to run

    key = jax.random.PRNGKey(0)
    pkey, ikey = jax.random.split(key)
    params = init_params(pkey, num_layers, num_heads, ffn_dim, dim,
                         vocab_size, block_size)
    idx = jax.random.randint(ikey, (B, S), 0, vocab_size, dtype=jnp.int32)

    fwd = jax.jit(functools.partial(forward, num_heads=num_heads))
    logits = fwd(params, idx)
    jax.block_until_ready(logits)
    assert logits.shape == (B, S, vocab_size)
    assert bool(jnp.all(jnp.isfinite(logits)))
    print("KERNEL_OK")
</pallas_src>

<mosaic_0001>
module attributes {stable_mosaic.version = 11 : i64} {
  func.func @_matmul_bias_kernel(%arg0: i32, %arg1: i32, %arg2: i32, %arg3: memref<8x32xbf16, #tpu.memory_space<vmem>>, %arg4: memref<32x96xbf16, #tpu.memory_space<vmem>>, %arg5: memref<1x96xf32, #tpu.memory_space<vmem>>, %arg6: memref<8x96xbf16, #tpu.memory_space<vmem>>, %arg7: memref<8x96xf32, #tpu.memory_space<vmem>>) attributes {dimension_semantics = [#tpu.dimension_semantics<parallel>, #tpu.dimension_semantics<parallel>, #tpu.dimension_semantics<arbitrary>], iteration_bounds = array<i64: 2, 1, 1>, scalar_prefetch = 0 : i64, scratch_operands = 1 : i64, tpu.core_type = #tpu.core_type<tc>, window_params = [{transform_indices = @transform_0, window_bounds = array<i64: 8, 32>}, {transform_indices = @transform_1, window_bounds = array<i64: 32, 96>}, {transform_indices = @transform_2, window_bounds = array<i64: 1, 96>}, {transform_indices = @transform_3, window_bounds = array<i64: 8, 96>}]} {
    %c0_i32 = arith.constant 0 : i32
    %0 = arith.cmpi eq, %arg2, %c0_i32 : i32
    %1 = arith.extui %0 : i1 to i32
    %c0_i32_0 = arith.constant 0 : i32
    %2 = arith.cmpi ne, %1, %c0_i32_0 : i32
    scf.if %2 {
      %cst_10 = arith.constant 0.000000e+00 : f32
      %12 = vector.broadcast %cst_10 : f32 to vector<8x96xf32>
      %c0_11 = arith.constant 0 : index
      %c0_12 = arith.constant 0 : index
      %13 = vector.load %arg7[%c0_11, %c0_12] : memref<8x96xf32, #tpu.memory_space<vmem>>, vector<8x96xf32>
      tpu.vector_store %arg7[%c0_11, %c0_12], %12 {strides = array<i32>} : memref<8x96xf32, #tpu.memory_space<vmem>>, vector<8x96xf32>,
    } else {
    }
    %c0 = arith.constant 0 : index
    %c0_1 = arith.constant 0 : index
    %3 = vector.load %arg7[%c0, %c0_1] : memref<8x96xf32, #tpu.memory_space<vmem>>, vector<8x96xf32>
    %c0_2 = arith.constant 0 : index
    %c0_3 = arith.constant 0 : index
    %4 = vector.load %arg3[%c0_2, %c0_3] : memref<8x32xbf16, #tpu.memory_space<vmem>>, vector<8x32xbf16>
    %c0_4 = arith.constant 0 : index
    %c0_5 = arith.constant 0 : index
    %5 = vector.load %arg4[%c0_4, %c0_5] : memref<32x96xbf16, #tpu.memory_space<vmem>>, vector<32x96xbf16>
    %cst = arith.constant dense<0.000000e+00> : vector<8x96xf32>
    %6 = tpu.matmul %4, %5, %cst {dimension_numbers = #tpu.dot_dimension_numbers<[1], [0], [0], [1], [0, 0, 1, 1], [], []>} : vector<8x32xbf16>, vector<32x96xbf16>, vector<8x96xf32> -> vector<8x96xf32>
    %7 = arith.addf %3, %6 : vector<8x96xf32>
    %c0_6 = arith.constant 0 : index
    %c0_7 = arith.constant 0 : index
    %8 = vector.load %arg7[%c0_6, %c0_7] : memref<8x96xf32, #tpu.memory_space<vmem>>, vector<8x96xf32>
    tpu.vector_store %arg7[%c0_6, %c0_7], %7 {strides = array<i32>} : memref<8x96xf32, #tpu.memory_space<vmem>>, vector<8x96xf32>,
    %c0_i32_8 = arith.constant 0 : i32
    %9 = arith.cmpi eq, %arg2, %c0_i32_8 : i32
    %10 = arith.extui %9 : i1 to i32
    %c0_i32_9 = arith.constant 0 : i32
    %11 = arith.cmpi ne, %10, %c0_i32_9 : i32
    scf.if %11 {
      %c0_10 = arith.constant 0 : index
      %c0_11 = arith.constant 0 : index
      %12 = vector.load %arg7[%c0_10, %c0_11] : memref<8x96xf32, #tpu.memory_space<vmem>>, vector<8x96xf32>
      %c0_12 = arith.constant 0 : index
      %c0_13 = arith.constant 0 : index
      %13 = vector.load %arg5[%c0_12, %c0_13] : memref<1x96xf32, #tpu.memory_space<vmem>>, vector<1x96xf32>
      %14 = vector.broadcast %13 : vector<1x96xf32> to vector<8x96xf32>
      %15 = arith.addf %12, %14 : vector<8x96xf32>
      %16 = arith.truncf %15 : vector<8x96xf32> to vector<8x96xbf16>
      %c0_14 = arith.constant 0 : index
      %c0_15 = arith.constant 0 : index
      %17 = vector.load %arg6[%c0_14, %c0_15] : memref<8x96xbf16, #tpu.memory_space<vmem>>, vector<8x96xbf16>
      tpu.vector_store %arg6[%c0_14, %c0_15], %16 {strides = array<i32>} : memref<8x96xbf16, #tpu.memory_space<vmem>>, vector<8x96xbf16>,
    } else {
    }
    return
  }
  func.func @transform_0(%arg0: i32, %arg1: i32, %arg2: i32) -> (i32, i32) {
    %c0_i32 = arith.constant 0 : i32
    return %arg0, %arg2 : i32, i32
  }
  func.func @transform_1(%arg0: i32, %arg1: i32, %arg2: i32) -> (i32, i32) {
    %c0_i32 = arith.constant 0 : i32
    return %arg2, %arg1 : i32, i32
  }
  func.func @transform_2(%arg0: i32, %arg1: i32, %arg2: i32) -> (i32, i32) {
    %c0_i32 = arith.constant 0 : i32
    %c0_i32_0 = arith.constant 0 : i32
    return %c0_i32, %arg1 : i32, i32
  }
  func.func @transform_3(%arg0: i32, %arg1: i32, %arg2: i32) -> (i32, i32) {
    %c0_i32 = arith.constant 0 : i32
    return %arg0, %arg1 : i32, i32
  }
}

module attributes {stable_mosaic.version = 11 : i64} {
  func.func @_attn_kernel(%arg0: i32, %arg1: memref<8x96xbf16, #tpu.memory_space<vmem>>, %arg2: memref<8x32xbf16, #tpu.memory_space<vmem>>) attributes {dimension_semantics = [#tpu.dimension_semantics<parallel>], iteration_bounds = array<i64: 2>, scalar_prefetch = 0 : i64, scratch_operands = 0 : i64, tpu.core_type = #tpu.core_type<tc>, window_params = [{transform_indices = @transform_0, window_bounds = array<i64: 8, 96>}, {transform_indices = @transform_1, window_bounds = array<i64: 8, 32>}]} {
    %0 = tpu.iota {dimensions = array<i32: 0>} : vector<8x8xi32>
    %1 = tpu.iota {dimensions = array<i32: 1>} : vector<8x8xi32>
    %2 = arith.cmpi sle, %1, %0 : vector<8x8xi32>
    %c0 = arith.constant 0 : index
    %c0_0 = arith.constant 0 : index
    %3 = vector.load %arg1[%c0, %c0_0] : memref<8x96xbf16, #tpu.memory_space<vmem>>, vector<8x32xbf16>
    %c0_1 = arith.constant 0 : index
    %c32 = arith.constant 32 : index
    %4 = vector.load %arg1[%c0_1, %c32] : memref<8x96xbf16, #tpu.memory_space<vmem>>, vector<8x32xbf16>
    %c0_2 = arith.constant 0 : index
    %c64 = arith.constant 64 : index
    %5 = vector.load %arg1[%c0_2, %c64] : memref<8x96xbf16, #tpu.memory_space<vmem>>, vector<8x32xbf16>
    %6 = vector.extract_strided_slice %3 {offsets = [0, 0], sizes = [8, 4], strides = [1, 1]} : vector<8x32xbf16> to vector<8x4xbf16>
    %7 = vector.extract_strided_slice %4 {offsets = [0, 0], sizes = [8, 4], strides = [1, 1]} : vector<8x32xbf16> to vector<8x4xbf16>
    %8 = vector.extract_strided_slice %5 {offsets = [0, 0], sizes = [8, 4], strides = [1, 1]} : vector<8x32xbf16> to vector<8x4xbf16>
    %cst = arith.constant dense<0.000000e+00> : vector<8x8xf32>
    %9 = tpu.matmul %6, %7, %cst {dimension_numbers = #tpu.dot_dimension_numbers<[1], [1], [0], [0], [0, 0, 1, 0], [], []>} : vector<8x4xbf16>, vector<8x4xbf16>, vector<8x8xf32> -> vector<8x8xf32>
    %cst_3 = arith.constant 2.500000e-01 : f32
    %10 = vector.broadcast %cst_3 : f32 to vector<8x8xf32>
    %11 = arith.mulf %9, %10 : vector<8x8xf32>
    %cst_4 = arith.constant 0xFF800000 : f32
    %12 = vector.broadcast %cst_4 : f32 to vector<8x8xf32>
    %13 = arith.select %2, %11, %12 : vector<8x8xi1>, vector<8x8xf32>
    %cst_5 = arith.constant dense<0xFF800000> : vector<8xf32>
    %14 = vector.multi_reduction <maximumf>, %13, %cst_5 [1] : vector<8x8xf32> to vector<8xf32>
    %15 = vector.shape_cast %14 : vector<8xf32> to vector<8x1xf32>
    %16 = vector.broadcast %15 : vector<8x1xf32> to vector<8x8xf32>
    %17 = arith.subf %13, %16 : vector<8x8xf32>
    %18 = math.exp %17 : vector<8x8xf32>
    %cst_6 = arith.constant dense<0.000000e+00> : vector<8xf32>
    %19 = vector.multi_reduction <add>, %18, %cst_6 [1] : vector<8x8xf32> to vector<8xf32>
    %20 = vector.shape_cast %19 : vector<8xf32> to vector<8x1xf32>
    %21 = vector.broadcast %20 : vector<8x1xf32> to vector<8x8xf32>
    %22 = arith.divf %18, %21 : vector<8x8xf32>
    %23 = arith.truncf %22 : vector<8x8xf32> to vector<8x8xbf16>
    %cst_7 = arith.constant dense<0.000000e+00> : vector<8x4xf32>
    %24 = tpu.matmul %23, %8, %cst_7 {dimension_numbers = #tpu.dot_dimension_numbers<[1], [0], [0], [1], [0, 0, 1, 1], [], []>} : vector<8x8xbf16>, vector<8x4xbf16>, vector<8x4xf32> -> vector<8x4xf32>
    %25 = vector.extract_strided_slice %3 {offsets = [0, 4], sizes = [8, 4], strides = [1, 1]} : vector<8x32xbf16> to vector<8x4xbf16>
    %26 = vector.extract_strided_slice %4 {offsets = [0, 4], sizes = [8, 4], strides = [1, 1]} : vector<8x32xbf16> to vector<8x4xbf16>
    %27 = vector.extract_strided_slice %5 {offsets = [0, 4], sizes = [8, 4], strides = [1, 1]} : vector<8x32xbf16> to vector<8x4xbf16>
    %cst_8 = arith.constant dense<0.000000e+00> : vector<8x8xf32>
    %28 = tpu.matmul %25, %26, %cst_8 {dimension_numbers = #tpu.dot_dimension_numbers<[1], [1], [0], [0], [0, 0, 1, 0], [], []>} : vector<8x4xbf16>, vector<8x4xbf16>, vector<8x8xf32> -> vector<8x8xf32>
    %cst_9 = arith.constant 2.500000e-01 : f32
    %29 = vector.broadcast %cst_9 : f32 to vector<8x8xf32>
    %30 = arith.mulf %28, %29 : vector<8x8xf32>
    %cst_10 = arith.constant 0xFF800000 : f32
    %31 = vector.broadcast %cst_10 : f32 to vector<8x8xf32>
    %32 = arith.select %2, %30, %31 : vector<8x8xi1>, vector<8x8xf32>
    %cst_11 = arith.constant dense<0xFF800000> : vector<8xf32>
    %33 = vector.multi_reduction <maximumf>, %32, %cst_11 [1] : vector<8x8xf32> to vector<8xf32>
    %34 = vector.shape_cast %33 : vector<8xf32> to vector<8x1xf32>
    %35 = vector.broadcast %34 : vector<8x1xf32> to vector<8x8xf32>
    %36 = arith.subf %32, %35 : vector<8x8xf32>
    %37 = math.exp %36 : vector<8x8xf32>
    %cst_12 = arith.constant dense<0.000000e+00> : vector<8xf32>
    %38 = vector.multi_reduction <add>, %37, %cst_12 [1] : vector<8x8xf32> to vector<8xf32>
    %39 = vector.shape_cast %38 : vector<8xf32> to vector<8x1xf32>
    %40 = vector.broadcast %39 : vector<8x1xf32> to vector<8x8xf32>
    %41 = arith.divf %37, %40 : vector<8x8xf32>
    %42 = arith.truncf %41 : vector<8x8xf32> to vector<8x8xbf16>
    %cst_13 = arith.constant dense<0.000000e+00> : vector<8x4xf32>
    %43 = tpu.matmul %42, %27, %cst_13 {dimension_numbers = #tpu.dot_dimension_numbers<[1], [0], [0], [1], [0, 0, 1, 1], [], []>} : vector<8x8xbf16>, vector<8x4xbf16>, vector<8x4xf32> -> vector<8x4xf32>
    %44 = vector.extract_strided_slice %3 {offsets = [0, 8], sizes = [8, 4], strides = [1, 1]} : vector<8x32xbf16> to vector<8x4xbf16>
    %45 = vector.extract_strided_slice %4 {offsets = [0, 8], sizes = [8, 4], strides = [1, 1]} : vector<8x32xbf16> to vector<8x4xbf16>
    %46 = vector.extract_strided_slice %5 {offsets = [0, 8], sizes = [8, 4], strides = [1, 1]} : vector<8x32xbf16> to vector<8x4xbf16>
    %cst_14 = arith.constant dense<0.000000e+00> : vector<8x8xf32>
    %47 = tpu.matmul %44, %45, %cst_14 {dimension_numbers = #tpu.dot_dimension_numbers<[1], [1], [0], [0], [0, 0, 1, 0], [], []>} : vector<8x4xbf16>, vector<8x4xbf16>, vector<8x8xf32> -> vector<8x8xf32>
    %cst_15 = arith.constant 2.500000e-01 : f32
    %48 = vector.broadcast %cst_15 : f32 to vector<8x8xf32>
    %49 = arith.mulf %47, %48 : vector<8x8xf32>
    %cst_16 = arith.constant 0xFF800000 : f32
    %50 = vector.broadcast %cst_16 : f32 to vector<8x8xf32>
    %51 = arith.select %2, %49, %50 : vector<8x8xi1>, vector<8x8xf32>
    %cst_17 = arith.constant dense<0xFF800000> : vector<8xf32>
    %52 = vector.multi_reduction <maximumf>, %51, %cst_17 [1] : vector<8x8xf32> to vector<8xf32>
    %53 = vector.shape_cast %52 : vector<8xf32> to vector<8x1xf32>
    %54 = vector.broadcast %53 : vector<8x1xf32> to vector<8x8xf32>
    %55 = arith.subf %51, %54 : vector<8x8xf32>
    %56 = math.exp %55 : vector<8x8xf32>
    %cst_18 = arith.constant dense<0.000000e+00> : vector<8xf32>
    %57 = vector.multi_reduction <add>, %56, %cst_18 [1] : vector<8x8xf32> to vector<8xf32>
    %58 = vector.shape_cast %57 : vector<8xf32> to vector<8x1xf32>
    %59 = vector.broadcast %58 : vector<8x1xf32> to vector<8x8xf32>
    %60 = arith.divf %56, %59 : vector<8x8xf32>
    %61 = arith.truncf %60 : vector<8x8xf32> to vector<8x8xbf16>
    %cst_19 = arith.constant dense<0.000000e+00> : vector<8x4xf32>
    %62 = tpu.matmul %61, %46, %cst_19 {dimension_numbers = #tpu.dot_dimension_numbers<[1], [0], [0], [1], [0, 0, 1, 1], [], []>} : vector<8x8xbf16>, vector<8x4xbf16>, vector<8x4xf32> -> vector<8x4xf32>
    %63 = vector.extract_strided_slice %3 {offsets = [0, 12], sizes = [8, 4], strides = [1, 1]} : vector<8x32xbf16> to vector<8x4xbf16>
    %64 = vector.extract_strided_slice %4 {offsets = [0, 12], sizes = [8, 4], strides = [1, 1]} : vector<8x32xbf16> to vector<8x4xbf16>
    %65 = vector.extract_strided_slice %5 {offsets = [0, 12], sizes = [8, 4], strides = [1, 1]} : vector<8x32xbf16> to vector<8x4xbf16>
    %cst_20 = arith.constant dense<0.000000e+00> : vector<8x8xf32>
    %66 = tpu.matmul %63, %64, %cst_20 {dimension_numbers = #tpu.dot_dimension_numbers<[1], [1], [0], [0], [0, 0, 1, 0], [], []>} : vector<8x4xbf16>, vector<8x4xbf16>, vector<8x8xf32> -> vector<8x8xf32>
    %cst_21 = arith.constant 2.500000e-01 : f32
    %67 = vector.broadcast %cst_21 : f32 to vector<8x8xf32>
    %68 = arith.mulf %66, %67 : vector<8x8xf32>
    %cst_22 = arith.constant 0xFF800000 : f32
    %69 = vector.broadcast %cst_22 : f32 to vector<8x8xf32>
    %70 = arith.select %2, %68, %69 : vector<8x8xi1>, vector<8x8xf32>
    %cst_23 = arith.constant dense<0xFF800000> : vector<8xf32>
    %71 = vector.multi_reduction <maximumf>, %70, %cst_23 [1] : vector<8x8xf32> to vector<8xf32>
    %72 = vector.shape_cast %71 : vector<8xf32> to vector<8x1xf32>
    %73 = vector.broadcast %72 : vector<8x1xf32> to vector<8x8xf32>
    %74 = arith.subf %70, %73 : vector<8x8xf32>
    %75 = math.exp %74 : vector<8x8xf32>
    %cst_24 = arith.constant dense<0.000000e+00> : vector<8xf32>
    %76 = vector.multi_reduction <add>, %75, %cst_24 [1] : vector<8x8xf32> to vector<8xf32>
    %77 = vector.shape_cast %76 : vector<8xf32> to vector<8x1xf32>
    %78 = vector.broadcast %77 : vector<8x1xf32> to vector<8x8xf32>
    %79 = arith.divf %75, %78 : vector<8x8xf32>
    %80 = arith.truncf %79 : vector<8x8xf32> to vector<8x8xbf16>
    %cst_25 = arith.constant dense<0.000000e+00> : vector<8x4xf32>
    %81 = tpu.matmul %80, %65, %cst_25 {dimension_numbers = #tpu.dot_dimension_numbers<[1], [0], [0], [1], [0, 0, 1, 1], [], []>} : vector<8x8xbf16>, vector<8x4xbf16>, vector<8x4xf32> -> vector<8x4xf32>
    %82 = vector.extract_strided_slice %3 {offsets = [0, 16], sizes = [8, 4], strides = [1, 1]} : vector<8x32xbf16> to vector<8x4xbf16>
    %83 = vector.extract_strided_slice %4 {offsets = [0, 16], sizes = [8, 4], strides = [1, 1]} : vector<8x32xbf16> to vector<8x4xbf16>
    %84 = vector.extract_strided_slice %5 {offsets = [0, 16], sizes = [8, 4], strides = [1, 1]} : vector<8x32xbf16> to vector<8x4xbf16>
    %cst_26 = arith.constant dense<0.000000e+00> : vector<8x8xf32>
    %85 = tpu.matmul %82, %83, %cst_26 {dimension_numbers = #tpu.dot_dimension_numbers<[1], [1], [0], [0], [0, 0, 1, 0], [], []>} : vector<8x4xbf16>, vector<8x4xbf16>, vector<8x8xf32> -> vector<8x8xf32>
    %cst_27 = arith.constant 2.500000e-01 : f32
    %86 = vector.broadcast %cst_27 : f32 to vector<8x8xf32>
    %87 = arith.mulf %85, %86 : vector<8x8xf32>
    %cst_28 = arith.constant 0xFF800000 : f32
    %88 = vector.broadcast %cst_28 : f32 to vector<8x8xf32>
    %89 = arith.select %2, %87, %88 : vector<8x8xi1>, vector<8x8xf32>
    %cst_29 = arith.constant dense<0xFF800000> : vector<8xf32>
    %90 = vector.multi_reduction <maximumf>, %89, %cst_29 [1] : vector<8x8xf32> to vector<8xf32>
    %91 = vector.shape_cast %90 : vector<8xf32> to vector<8x1xf32>
    %92 = vector.broadcast %91 : vector<8x1xf32> to vector<8x8xf32>
    %93 = arith.subf %89, %92 : vector<8x8xf32>
    %94 = math.exp %93 : vector<8x8xf32>
    %cst_30 = arith.constant dense<0.000000e+00> : vector<8xf32>
    %95 = vector.multi_reduction <add>, %94, %cst_30 [1] : vector<8x8xf32> to vector<8xf32>
    %96 = vector.shape_cast %95 : vector<8xf32> to vector<8x1xf32>
    %97 = vector.broadcast %96 : vector<8x1xf32> to vector<8x8xf32>
    %98 = arith.divf %94, %97 : vector<8x8xf32>
    %99 = arith.truncf %98 : vector<8x8xf32> to vector<8x8xbf16>
    %cst_31 = arith.constant dense<0.000000e+00> : vector<8x4xf32>
    %100 = tpu.matmul %99, %84, %cst_31 {dimension_numbers = #tpu.dot_dimension_numbers<[1], [0], [0], [1], [0, 0, 1, 1], [], []>} : vector<8x8xbf16>, vector<8x4xbf16>, vector<8x4xf32> -> vector<8x4xf32>
    %101 = vector.extract_strided_slice %3 {offsets = [0, 20], sizes = [8, 4], strides = [1, 1]} : vector<8x32xbf16> to vector<8x4xbf16>
    %102 = vector.extract_strided_slice %4 {offsets = [0, 20], sizes = [8, 4], strides = [1, 1]} : vector<8x32xbf16> to vector<8x4xbf16>
    %103 = vector.extract_strided_slice %5 {offsets = [0, 20], sizes = [8, 4], strides = [1, 1]} : vector<8x32xbf16> to vector<8x4xbf16>
    %cst_32 = arith.constant dense<0.000000e+00> : vector<8x8xf32>
    %104 = tpu.matmul %101, %102, %cst_32 {dimension_numbers = #tpu.dot_dimension_numbers<[1], [1], [0], [0], [0, 0, 1, 0], [], []>} : vector<8x4xbf16>, vector<8x4xbf16>, vector<8x8xf32> -> vector<8x8xf32>
    %cst_33 = arith.constant 2.500000e-01 : f32
    %105 = vector.broadcast %cst_33 : f32 to vector<8x8xf32>
    %106 = arith.mulf %104, %105 : vector<8x8xf32>
    %cst_34 = arith.constant 0xFF800000 : f32
    %107 = vector.broadcast %cst_34 : f32 to vector<8x8xf32>
    %108 = arith.select %2, %106, %107 : vector<8x8xi1>, vector<8x8xf32>
    %cst_35 = arith.constant dense<0xFF800000> : vector<8xf32>
    %109 = vector.multi_reduction <maximumf>, %108, %cst_35 [1] : vector<8x8xf32> to vector<8xf32>
    %110 = vector.shape_cast %109 : vector<8xf32> to vector<8x1xf32>
    %111 = vector.broadcast %110 : vector<8x1xf32> to vector<8x8xf32>
    %112 = arith.subf %108, %111 : vector<8x8xf32>
    %113 = math.exp %112 : vector<8x8xf32>
    %cst_36 = arith.constant dense<0.000000e+00> : vector<8xf32>
    %114 = vector.multi_reduction <add>, %113, %cst_36 [1] : vector<8x8xf32> to vector<8xf32>
    %115 = vector.shape_cast %114 : vector<8xf32> to vector<8x1xf32>
    %116 = vector.broadcast %115 : vector<8x1xf32> to vector<8x8xf32>
    %117 = arith.divf %113, %116 : vector<8x8xf32>
    %118 = arith.truncf %117 : vector<8x8xf32> to vector<8x8xbf16>
    %cst_37 = arith.constant dense<0.000000e+00> : vector<8x4xf32>
    %119 = tpu.matmul %118, %103, %cst_37 {dimension_numbers = #tpu.dot_dimension_numbers<[1], [0], [0], [1], [0, 0, 1, 1], [], []>} : vector<8x8xbf16>, vector<8x4xbf16>, vector<8x4xf32> -> vector<8x4xf32>
    %120 = vector.extract_strided_slice %3 {offsets = [0, 24], sizes = [8, 4], strides = [1, 1]} : vector<8x32xbf16> to vector<8x4xbf16>
    %121 = vector.extract_strided_slice %4 {offsets = [0, 24], sizes = [8, 4], strides = [1, 1]} : vector<8x32xbf16> to vector<8x4xbf16>
    %122 = vector.extract_strided_slice %5 {offsets = [0, 24], sizes = [8, 4], strides = [1, 1]} : vector<8x32xbf16> to vector<8x4xbf16>
    %cst_38 = arith.constant dense<0.000000e+00> : vector<8x8xf32>
    %123 = tpu.matmul %120, %121, %cst_38 {dimension_numbers = #tpu.dot_dimension_numbers<[1], [1], [0], [0], [0, 0, 1, 0], [], []>} : vector<8x4xbf16>, vector<8x4xbf16>, vector<8x8xf32> -> vector<8x8xf32>
    %cst_39 = arith.constant 2.500000e-01 : f32
    %124 = vector.broadcast %cst_39 : f32 to vector<8x8xf32>
    %125 = arith.mulf %123, %124 : vector<8x8xf32>
    %cst_40 = arith.constant 0xFF800000 : f32
    %126 = vector.broadcast %cst_40 : f32 to vector<8x8xf32>
    %127 = arith.select %2, %125, %126 : vector<8x8xi1>, vector<8x8xf32>
    %cst_41 = arith.constant dense<0xFF800000> : vector<8xf32>
    %128 = vector.multi_reduction <maximumf>, %127, %cst_41 [1] : vector<8x8xf32> to vector<8xf32>
    %129 = vector.shape_cast %128 : vector<8xf32> to vector<8x1xf32>
    %130 = vector.broadcast %129 : vector<8x1xf32> to vector<8x8xf32>
    %131 = arith.subf %127, %130 : vector<8x8xf32>
    %132 = math.exp %131 : vector<8x8xf32>
    %cst_42 = arith.constant dense<0.000000e+00> : vector<8xf32>
    %133 = vector.multi_reduction <add>, %132, %cst_42 [1] : vector<8x8xf32> to vector<8xf32>
    %134 = vector.shape_cast %133 : vector<8xf32> to vector<8x1xf32>
    %135 = vector.broadcast %134 : vector<8x1xf32> to vector<8x8xf32>
    %136 = arith.divf %132, %135 : vector<8x8xf32>
    %137 = arith.truncf %136 : vector<8x8xf32> to vector<8x8xbf16>
    %cst_43 = arith.constant dense<0.000000e+00> : vector<8x4xf32>
    %138 = tpu.matmul %137, %122, %cst_43 {dimension_numbers = #tpu.dot_dimension_numbers<[1], [0], [0], [1], [0, 0, 1, 1], [], []>} : vector<8x8xbf16>, vector<8x4xbf16>, vector<8x4xf32> -> vector<8x4xf32>
    %139 = vector.extract_strided_slice %3 {offsets = [0, 28], sizes = [8, 4], strides = [1, 1]} : vector<8x32xbf16> to vector<8x4xbf16>
    %140 = vector.extract_strided_slice %4 {offsets = [0, 28], sizes = [8, 4], strides = [1, 1]} : vector<8x32xbf16> to vector<8x4xbf16>
    %141 = vector.extract_strided_slice %5 {offsets = [0, 28], sizes = [8, 4], strides = [1, 1]} : vector<8x32xbf16> to vector<8x4xbf16>
    %cst_44 = arith.constant dense<0.000000e+00> : vector<8x8xf32>
    %142 = tpu.matmul %139, %140, %cst_44 {dimension_numbers = #tpu.dot_dimension_numbers<[1], [1], [0], [0], [0, 0, 1, 0], [], []>} : vector<8x4xbf16>, vector<8x4xbf16>, vector<8x8xf32> -> vector<8x8xf32>
    %cst_45 = arith.constant 2.500000e-01 : f32
    %143 = vector.broadcast %cst_45 : f32 to vector<8x8xf32>
    %144 = arith.mulf %142, %143 : vector<8x8xf32>
    %cst_46 = arith.constant 0xFF800000 : f32
    %145 = vector.broadcast %cst_46 : f32 to vector<8x8xf32>
    %146 = arith.select %2, %144, %145 : vector<8x8xi1>, vector<8x8xf32>
    %cst_47 = arith.constant dense<0xFF800000> : vector<8xf32>
    %147 = vector.multi_reduction <maximumf>, %146, %cst_47 [1] : vector<8x8xf32> to vector<8xf32>
    %148 = vector.shape_cast %147 : vector<8xf32> to vector<8x1xf32>
    %149 = vector.broadcast %148 : vector<8x1xf32> to vector<8x8xf32>
    %150 = arith.subf %146, %149 : vector<8x8xf32>
    %151 = math.exp %150 : vector<8x8xf32>
    %cst_48 = arith.constant dense<0.000000e+00> : vector<8xf32>
    %152 = vector.multi_reduction <add>, %151, %cst_48 [1] : vector<8x8xf32> to vector<8xf32>
    %153 = vector.shape_cast %152 : vector<8xf32> to vector<8x1xf32>
    %154 = vector.broadcast %153 : vector<8x1xf32> to vector<8x8xf32>
    %155 = arith.divf %151, %154 : vector<8x8xf32>
    %156 = arith.truncf %155 : vector<8x8xf32> to vector<8x8xbf16>
    %cst_49 = arith.constant dense<0.000000e+00> : vector<8x4xf32>
    %157 = tpu.matmul %156, %141, %cst_49 {dimension_numbers = #tpu.dot_dimension_numbers<[1], [0], [0], [1], [0, 0, 1, 1], [], []>} : vector<8x8xbf16>, vector<8x4xbf16>, vector<8x4xf32> -> vector<8x4xf32>
    %158 = tpu.concatenate %24, %43, %62, %81, %100, %119, %138, %157 in 1 : vector<8x4xf32>, vector<8x4xf32>, vector<8x4xf32>, vector<8x4xf32>, vector<8x4xf32>, vector<8x4xf32>, vector<8x4xf32>, vector<8x4xf32> -> vector<8x32xf32>
    %159 = arith.truncf %158 : vector<8x32xf32> to vector<8x32xbf16>
    %c0_50 = arith.constant 0 : index
    %c0_51 = arith.constant 0 : index
    %160 = vector.load %arg2[%c0_50, %c0_51] : memref<8x32xbf16, #tpu.memory_space<vmem>>, vector<8x32xbf16>
    tpu.vector_store %arg2[%c0_50, %c0_51], %159 {strides = array<i32>} : memref<8x32xbf16, #tpu.memory_space<vmem>>, vector<8x32xbf16>,
    return
  }
  func.func @transform_0(%arg0: i32) -> (i32, i32) {
    %c0_i32 = arith.constant 0 : i32
    %c0_i32_0 = arith.constant 0 : i32
    return %arg0, %c0_i32 : i32, i32
  }
  func.func @transform_1(%arg0: i32) -> (i32, i32) {
    %c0_i32 = arith.constant 0 : i32
    %c0_i32_0 = arith.constant 0 : i32
    return %arg0, %c0_i32 : i32, i32
  }
}

module attributes {stable_mosaic.version = 11 : i64} {
  func.func @_matmul_bias_kernel(%arg0: i32, %arg1: i32, %arg2: i32, %arg3: memref<8x32xbf16, #tpu.memory_space<vmem>>, %arg4: memref<32x64xbf16, #tpu.memory_space<vmem>>, %arg5: memref<1x64xf32, #tpu.memory_space<vmem>>, %arg6: memref<8x64xbf16, #tpu.memory_space<vmem>>, %arg7: memref<8x64xf32, #tpu.memory_space<vmem>>) attributes {dimension_semantics = [#tpu.dimension_semantics<parallel>, #tpu.dimension_semantics<parallel>, #tpu.dimension_semantics<arbitrary>], iteration_bounds = array<i64: 2, 1, 1>, scalar_prefetch = 0 : i64, scratch_operands = 1 : i64, tpu.core_type = #tpu.core_type<tc>, window_params = [{transform_indices = @transform_0, window_bounds = array<i64: 8, 32>}, {transform_indices = @transform_1, window_bounds = array<i64: 32, 64>}, {transform_indices = @transform_2, window_bounds = array<i64: 1, 64>}, {transform_indices = @transform_3, window_bounds = array<i64: 8, 64>}]} {
    %c0_i32 = arith.constant 0 : i32
    %0 = arith.cmpi eq, %arg2, %c0_i32 : i32
    %1 = arith.extui %0 : i1 to i32
    %c0_i32_0 = arith.constant 0 : i32
    %2 = arith.cmpi ne, %1, %c0_i32_0 : i32
    scf.if %2 {
      %cst_10 = arith.constant 0.000000e+00 : f32
      %12 = vector.broadcast %cst_10 : f32 to vector<8x64xf32>
      %c0_11 = arith.constant 0 : index
      %c0_12 = arith.constant 0 : index
      %13 = vector.load %arg7[%c0_11, %c0_12] : memref<8x64xf32, #tpu.memory_space<vmem>>, vector<8x64xf32>
      tpu.vector_store %arg7[%c0_11, %c0_12], %12 {strides = array<i32>} : memref<8x64xf32, #tpu.memory_space<vmem>>, vector<8x64xf32>,
    } else {
    }
    %c0 = arith.constant 0 : index
    %c0_1 = arith.constant 0 : index
    %3 = vector.load %arg7[%c0, %c0_1] : memref<8x64xf32, #tpu.memory_space<vmem>>, vector<8x64xf32>
    %c0_2 = arith.constant 0 : index
    %c0_3 = arith.constant 0 : index
    %4 = vector.load %arg3[%c0_2, %c0_3] : memref<8x32xbf16, #tpu.memory_space<vmem>>, vector<8x32xbf16>
    %c0_4 = arith.constant 0 : index
    %c0_5 = arith.constant 0 : index
    %5 = vector.load %arg4[%c0_4, %c0_5] : memref<32x64xbf16, #tpu.memory_space<vmem>>, vector<32x64xbf16>
    %cst = arith.constant dense<0.000000e+00> : vector<8x64xf32>
    %6 = tpu.matmul %4, %5, %cst {dimension_numbers = #tpu.dot_dimension_numbers<[1], [0], [0], [1], [0, 0, 1, 1], [], []>} : vector<8x32xbf16>, vector<32x64xbf16>, vector<8x64xf32> -> vector<8x64xf32>
    %7 = arith.addf %3, %6 : vector<8x64xf32>
    %c0_6 = arith.constant 0 : index
    %c0_7 = arith.constant 0 : index
    %8 = vector.load %arg7[%c0_6, %c0_7] : memref<8x64xf32, #tpu.memory_space<vmem>>, vector<8x64xf32>
    tpu.vector_store %arg7[%c0_6, %c0_7], %7 {strides = array<i32>} : memref<8x64xf32, #tpu.memory_space<vmem>>, vector<8x64xf32>,
    %c0_i32_8 = arith.constant 0 : i32
    %9 = arith.cmpi eq, %arg2, %c0_i32_8 : i32
    %10 = arith.extui %9 : i1 to i32
    %c0_i32_9 = arith.constant 0 : i32
    %11 = arith.cmpi ne, %10, %c0_i32_9 : i32
    scf.if %11 {
      %c0_10 = arith.constant 0 : index
      %c0_11 = arith.constant 0 : index
      %12 = vector.load %arg7[%c0_10, %c0_11] : memref<8x64xf32, #tpu.memory_space<vmem>>, vector<8x64xf32>
      %c0_12 = arith.constant 0 : index
      %c0_13 = arith.constant 0 : index
      %13 = vector.load %arg5[%c0_12, %c0_13] : memref<1x64xf32, #tpu.memory_space<vmem>>, vector<1x64xf32>
      %14 = vector.broadcast %13 : vector<1x64xf32> to vector<8x64xf32>
      %15 = arith.addf %12, %14 : vector<8x64xf32>
      %cst_14 = arith.constant 0.000000e+00 : f32
      %16 = vector.broadcast %cst_14 : f32 to vector<8x64xf32>
      %17 = arith.maximumf %15, %16 : vector<8x64xf32>
      %18 = arith.truncf %17 : vector<8x64xf32> to vector<8x64xbf16>
      %c0_15 = arith.constant 0 : index
      %c0_16 = arith.constant 0 : index
      %19 = vector.load %arg6[%c0_15, %c0_16] : memref<8x64xbf16, #tpu.memory_space<vmem>>, vector<8x64xbf16>
      tpu.vector_store %arg6[%c0_15, %c0_16], %18 {strides = array<i32>} : memref<8x64xbf16, #tpu.memory_space<vmem>>, vector<8x64xbf16>,
    } else {
    }
    return
  }
  func.func @transform_0(%arg0: i32, %arg1: i32, %arg2: i32) -> (i32, i32) {
    %c0_i32 = arith.constant 0 : i32
    return %arg0, %arg2 : i32, i32
  }
  func.func @transform_1(%arg0: i32, %arg1: i32, %arg2: i32) -> (i32, i32) {
    %c0_i32 = arith.constant 0 : i32
    return %arg2, %arg1 : i32, i32
  }
  func.func @transform_2(%arg0: i32, %arg1: i32, %arg2: i32) -> (i32, i32) {
    %c0_i32 = arith.constant 0 : i32
    %c0_i32_0 = arith.constant 0 : i32
    return %c0_i32, %arg1 : i32, i32
  }
  func.func @transform_3(%arg0: i32, %arg1: i32, %arg2: i32) -> (i32, i32) {
    %c0_i32 = arith.constant 0 : i32
    return %arg0, %arg1 : i32, i32
  }
}

module attributes {stable_mosaic.version = 11 : i64} {
  func.func @_matmul_res_ln_kernel(%arg0: i32, %arg1: i32, %arg2: memref<8x32xbf16, #tpu.memory_space<vmem>>, %arg3: memref<32x32xbf16, #tpu.memory_space<vmem>>, %arg4: memref<1x32xf32, #tpu.memory_space<vmem>>, %arg5: memref<8x32xbf16, #tpu.memory_space<vmem>>, %arg6: memref<1x32xf32, #tpu.memory_space<vmem>>, %arg7: memref<1x32xf32, #tpu.memory_space<vmem>>, %arg8: memref<8x32xbf16, #tpu.memory_space<vmem>>, %arg9: memref<8x32xf32, #tpu.memory_space<vmem>>) attributes {dimension_semantics = [#tpu.dimension_semantics<parallel>, #tpu.dimension_semantics<arbitrary>], iteration_bounds = array<i64: 2, 1>, scalar_prefetch = 0 : i64, scratch_operands = 1 : i64, tpu.core_type = #tpu.core_type<tc>, window_params = [{transform_indices = @transform_0, window_bounds = array<i64: 8, 32>}, {transform_indices = @transform_1, window_bounds = array<i64: 32, 32>}, {pipeline_mode = #tpu.pipeline_mode<synchronous>, transform_indices = @transform_2, window_bounds = array<i64: 1, 32>}, {transform_indices = @transform_3, window_bounds = array<i64: 8, 32>}, {pipeline_mode = #tpu.pipeline_mode<synchronous>, transform_indices = @transform_4, window_bounds = array<i64: 1, 32>}, {pipeline_mode = #tpu.pipeline_mode<synchronous>, transform_indices = @transform_5, window_bounds = array<i64: 1, 32>}, {transform_indices = @transform_6, window_bounds = array<i64: 8, 32>}]} {
    %c0_i32 = arith.constant 0 : i32
    %0 = arith.cmpi eq, %arg1, %c0_i32 : i32
    %1 = arith.extui %0 : i1 to i32
    %c0_i32_0 = arith.constant 0 : i32
    %2 = arith.cmpi ne, %1, %c0_i32_0 : i32
    scf.if %2 {
      %cst_10 = arith.constant 0.000000e+00 : f32
      %12 = vector.broadcast %cst_10 : f32 to vector<8x32xf32>
      %c0_11 = arith.constant 0 : index
      %c0_12 = arith.constant 0 : index
      %13 = vector.load %arg9[%c0_11, %c0_12] : memref<8x32xf32, #tpu.memory_space<vmem>>, vector<8x32xf32>
      tpu.vector_store %arg9[%c0_11, %c0_12], %12 {strides = array<i32>} : memref<8x32xf32, #tpu.memory_space<vmem>>, vector<8x32xf32>,
    } else {
    }
    %c0 = arith.constant 0 : index
    %c0_1 = arith.constant 0 : index
    %3 = vector.load %arg9[%c0, %c0_1] : memref<8x32xf32, #tpu.memory_space<vmem>>, vector<8x32xf32>
    %c0_2 = arith.constant 0 : index
    %c0_3 = arith.constant 0 : index
    %4 = vector.load %arg2[%c0_2, %c0_3] : memref<8x32xbf16, #tpu.memory_space<vmem>>, vector<8x32xbf16>
    %c0_4 = arith.constant 0 : index
    %c0_5 = arith.constant 0 : index
    %5 = vector.load %arg3[%c0_4, %c0_5] : memref<32x32xbf16, #tpu.memory_space<vmem>>, vector<32x32xbf16>
    %cst = arith.constant dense<0.000000e+00> : vector<8x32xf32>
    %6 = tpu.matmul %4, %5, %cst {dimension_numbers = #tpu.dot_dimension_numbers<[1], [0], [0], [1], [0, 0, 1, 1], [], []>} : vector<8x32xbf16>, vector<32x32xbf16>, vector<8x32xf32> -> vector<8x32xf32>
    %7 = arith.addf %3, %6 : vector<8x32xf32>
    %c0_6 = arith.constant 0 : index
    %c0_7 = arith.constant 0 : index
    %8 = vector.load %arg9[%c0_6, %c0_7] : memref<8x32xf32, #tpu.memory_space<vmem>>, vector<8x32xf32>
    tpu.vector_store %arg9[%c0_6, %c0_7], %7 {strides = array<i32>} : memref<8x32xf32, #tpu.memory_space<vmem>>, vector<8x32xf32>,
    %c0_i32_8 = arith.constant 0 : i32
    %9 = arith.cmpi eq, %arg1, %c0_i32_8 : i32
    %10 = arith.extui %9 : i1 to i32
    %c0_i32_9 = arith.constant 0 : i32
    %11 = arith.cmpi ne, %10, %c0_i32_9 : i32
    scf.if %11 {
      %c0_10 = arith.constant 0 : index
      %c0_11 = arith.constant 0 : index
      %12 = vector.load %arg9[%c0_10, %c0_11] : memref<8x32xf32, #tpu.memory_space<vmem>>, vector<8x32xf32>
      %c0_12 = arith.constant 0 : index
      %c0_13 = arith.constant 0 : index
      %13 = vector.load %arg4[%c0_12, %c0_13] : memref<1x32xf32, #tpu.memory_space<vmem>>, vector<1x32xf32>
      %14 = vector.broadcast %13 : vector<1x32xf32> to vector<8x32xf32>
      %15 = arith.addf %12, %14 : vector<8x32xf32>
      %c0_14 = arith.constant 0 : index
      %c0_15 = arith.constant 0 : index
      %16 = vector.load %arg5[%c0_14, %c0_15] : memref<8x32xbf16, #tpu.memory_space<vmem>>, vector<8x32xbf16>
      %17 = arith.extf %16 : vector<8x32xbf16> to vector<8x32xf32>
      %18 = arith.addf %15, %17 : vector<8x32xf32>
      %cst_16 = arith.constant dense<0.000000e+00> : vector<8xf32>
      %19 = vector.multi_reduction <add>, %18, %cst_16 [1] : vector<8x32xf32> to vector<8xf32>
      %20 = vector.shape_cast %19 : vector<8xf32> to vector<8x1xf32>
      %cst_17 = arith.constant 3.200000e+01 : f32
      %21 = vector.broadcast %cst_17 : f32 to vector<8x1xf32>
      %22 = arith.divf %20, %21 : vector<8x1xf32>
      %23 = vector.broadcast %22 : vector<8x1xf32> to vector<8x32xf32>
      %24 = arith.subf %18, %23 : vector<8x32xf32>
      %25 = arith.mulf %24, %24 : vector<8x32xf32>
      %cst_18 = arith.constant dense<0.000000e+00> : vector<8xf32>
      %26 = vector.multi_reduction <add>, %25, %cst_18 [1] : vector<8x32xf32> to vector<8xf32>
      %27 = vector.shape_cast %26 : vector<8xf32> to vector<8x1xf32>
      %cst_19 = arith.constant 0.0322580636 : f32
      %28 = vector.broadcast %cst_19 : f32 to vector<8x1xf32>
      %29 = arith.mulf %27, %28 : vector<8x1xf32>
      %cst_20 = arith.constant 9.99999974E-6 : f32
      %30 = vector.broadcast %cst_20 : f32 to vector<8x1xf32>
      %31 = arith.addf %29, %30 : vector<8x1xf32>
      %32 = math.rsqrt %31 : vector<8x1xf32>
      %c0_21 = arith.constant 0 : index
      %c0_22 = arith.constant 0 : index
      %33 = vector.load %arg6[%c0_21, %c0_22] : memref<1x32xf32, #tpu.memory_space<vmem>>, vector<1x32xf32>
      %34 = vector.broadcast %33 : vector<1x32xf32> to vector<8x32xf32>
      %35 = arith.mulf %34, %24 : vector<8x32xf32>
      %36 = vector.broadcast %32 : vector<8x1xf32> to vector<8x32xf32>
      %37 = arith.mulf %35, %36 : vector<8x32xf32>
      %c0_23 = arith.constant 0 : index
      %c0_24 = arith.constant 0 : index
      %38 = vector.load %arg7[%c0_23, %c0_24] : memref<1x32xf32, #tpu.memory_space<vmem>>, vector<1x32xf32>
      %39 = vector.broadcast %38 : vector<1x32xf32> to vector<8x32xf32>
      %40 = arith.addf %37, %39 : vector<8x32xf32>
      %41 = arith.truncf %40 : vector<8x32xf32> to vector<8x32xbf16>
      %c0_25 = arith.constant 0 : index
      %c0_26 = arith.constant 0 : index
      %42 = vector.load %arg8[%c0_25, %c0_26] : memref<8x32xbf16, #tpu.memory_space<vmem>>, vector<8x32xbf16>
      tpu.vector_store %arg8[%c0_25, %c0_26], %41 {strides = array<i32>} : memref<8x32xbf16, #tpu.memory_space<vmem>>, vector<8x32xbf16>,
    } else {
    }
    return
  }
  func.func @transform_0(%arg0: i32, %arg1: i32) -> (i32, i32) {
    %c0_i32 = arith.constant 0 : i32
    return %arg0, %arg1 : i32, i32
  }
  func.func @transform_1(%arg0: i32, %arg1: i32) -> (i32, i32) {
    %c0_i32 = arith.constant 0 : i32
    %c0_i32_0 = arith.constant 0 : i32
    return %arg1, %c0_i32 : i32, i32
  }
  func.func @transform_2(%arg0: i32, %arg1: i32) -> (i32, i32) {
    %c0_i32 = arith.constant 0 : i32
    %c0_i32_0 = arith.constant 0 : i32
    %c0_i32_1 = arith.constant 0 : i32
    return %c0_i32, %c0_i32_0 : i32, i32
  }
  func.func @transform_3(%arg0: i32, %arg1: i32) -> (i32, i32) {
    %c0_i32 = arith.constant 0 : i32
    %c0_i32_0 = arith.constant 0 : i32
    return %arg0, %c0_i32 : i32, i32
  }
  func.func @transform_4(%arg0: i32, %arg1: i32) -> (i32, i32) {
    %c0_i32 = arith.constant 0 : i32
    %c0_i32_0 = arith.constant 0 : i32
    %c0_i32_1 = arith.constant 0 : i32
    return %c0_i32, %c0_i32_0 : i32, i32
  }
  func.func @transform_5(%arg0: i32, %arg1: i32) -> (i32, i32) {
    %c0_i32 = arith.constant 0 : i32
    %c0_i32_0 = arith.constant 0 : i32
    %c0_i32_1 = arith.constant 0 : i32
    return %c0_i32, %c0_i32_0 : i32, i32
  }
  func.func @transform_6(%arg0: i32, %arg1: i32) -> (i32, i32) {
    %c0_i32 = arith.constant 0 : i32
    %c0_i32_0 = arith.constant 0 : i32
    return %arg0, %c0_i32 : i32, i32
  }
}

module attributes {stable_mosaic.version = 11 : i64} {
  func.func @_matmul_res_ln_kernel(%arg0: i32, %arg1: i32, %arg2: memref<8x64xbf16, #tpu.memory_space<vmem>>, %arg3: memref<64x32xbf16, #tpu.memory_space<vmem>>, %arg4: memref<1x32xf32, #tpu.memory_space<vmem>>, %arg5: memref<8x32xbf16, #tpu.memory_space<vmem>>, %arg6: memref<1x32xf32, #tpu.memory_space<vmem>>, %arg7: memref<1x32xf32, #tpu.memory_space<vmem>>, %arg8: memref<8x32xbf16, #tpu.memory_space<vmem>>, %arg9: memref<8x32xf32, #tpu.memory_space<vmem>>) attributes {dimension_semantics = [#tpu.dimension_semantics<parallel>, #tpu.dimension_semantics<arbitrary>], iteration_bounds = array<i64: 2, 1>, scalar_prefetch = 0 : i64, scratch_operands = 1 : i64, tpu.core_type = #tpu.core_type<tc>, window_params = [{transform_indices = @transform_0, window_bounds = array<i64: 8, 64>}, {transform_indices = @transform_1, window_bounds = array<i64: 64, 32>}, {pipeline_mode = #tpu.pipeline_mode<synchronous>, transform_indices = @transform_2, window_bounds = array<i64: 1, 32>}, {transform_indices = @transform_3, window_bounds = array<i64: 8, 32>}, {pipeline_mode = #tpu.pipeline_mode<synchronous>, transform_indices = @transform_4, window_bounds = array<i64: 1, 32>}, {pipeline_mode = #tpu.pipeline_mode<synchronous>, transform_indices = @transform_5, window_bounds = array<i64: 1, 32>}, {transform_indices = @transform_6, window_bounds = array<i64: 8, 32>}]} {
    %c0_i32 = arith.constant 0 : i32
    %0 = arith.cmpi eq, %arg1, %c0_i32 : i32
    %1 = arith.extui %0 : i1 to i32
    %c0_i32_0 = arith.constant 0 : i32
    %2 = arith.cmpi ne, %1, %c0_i32_0 : i32
    scf.if %2 {
      %cst_10 = arith.constant 0.000000e+00 : f32
      %12 = vector.broadcast %cst_10 : f32 to vector<8x32xf32>
      %c0_11 = arith.constant 0 : index
      %c0_12 = arith.constant 0 : index
      %13 = vector.load %arg9[%c0_11, %c0_12] : memref<8x32xf32, #tpu.memory_space<vmem>>, vector<8x32xf32>
      tpu.vector_store %arg9[%c0_11, %c0_12], %12 {strides = array<i32>} : memref<8x32xf32, #tpu.memory_space<vmem>>, vector<8x32xf32>,
    } else {
    }
    %c0 = arith.constant 0 : index
    %c0_1 = arith.constant 0 : index
    %3 = vector.load %arg9[%c0, %c0_1] : memref<8x32xf32, #tpu.memory_space<vmem>>, vector<8x32xf32>
    %c0_2 = arith.constant 0 : index
    %c0_3 = arith.constant 0 : index
    %4 = vector.load %arg2[%c0_2, %c0_3] : memref<8x64xbf16, #tpu.memory_space<vmem>>, vector<8x64xbf16>
    %c0_4 = arith.constant 0 : index
    %c0_5 = arith.constant 0 : index
    %5 = vector.load %arg3[%c0_4, %c0_5] : memref<64x32xbf16, #tpu.memory_space<vmem>>, vector<64x32xbf16>
    %cst = arith.constant dense<0.000000e+00> : vector<8x32xf32>
    %6 = tpu.matmul %4, %5, %cst {dimension_numbers = #tpu.dot_dimension_numbers<[1], [0], [0], [1], [0, 0, 1, 1], [], []>} : vector<8x64xbf16>, vector<64x32xbf16>, vector<8x32xf32> -> vector<8x32xf32>
    %7 = arith.addf %3, %6 : vector<8x32xf32>
    %c0_6 = arith.constant 0 : index
    %c0_7 = arith.constant 0 : index
    %8 = vector.load %arg9[%c0_6, %c0_7] : memref<8x32xf32, #tpu.memory_space<vmem>>, vector<8x32xf32>
    tpu.vector_store %arg9[%c0_6, %c0_7], %7 {strides = array<i32>} : memref<8x32xf32, #tpu.memory_space<vmem>>, vector<8x32xf32>,
    %c0_i32_8 = arith.constant 0 : i32
    %9 = arith.cmpi eq, %arg1, %c0_i32_8 : i32
    %10 = arith.extui %9 : i1 to i32
    %c0_i32_9 = arith.constant 0 : i32
    %11 = arith.cmpi ne, %10, %c0_i32_9 : i32
    scf.if %11 {
      %c0_10 = arith.constant 0 : index
      %c0_11 = arith.constant 0 : index
      %12 = vector.load %arg9[%c0_10, %c0_11] : memref<8x32xf32, #tpu.memory_space<vmem>>, vector<8x32xf32>
      %c0_12 = arith.constant 0 : index
      %c0_13 = arith.constant 0 : index
      %13 = vector.load %arg4[%c0_12, %c0_13] : memref<1x32xf32, #tpu.memory_space<vmem>>, vector<1x32xf32>
      %14 = vector.broadcast %13 : vector<1x32xf32> to vector<8x32xf32>
      %15 = arith.addf %12, %14 : vector<8x32xf32>
      %c0_14 = arith.constant 0 : index
      %c0_15 = arith.constant 0 : index
      %16 = vector.load %arg5[%c0_14, %c0_15] : memref<8x32xbf16, #tpu.memory_space<vmem>>, vector<8x32xbf16>
      %17 = arith.extf %16 : vector<8x32xbf16> to vector<8x32xf32>
      %18 = arith.addf %15, %17 : vector<8x32xf32>
      %cst_16 = arith.constant dense<0.000000e+00> : vector<8xf32>
      %19 = vector.multi_reduction <add>, %18, %cst_16 [1] : vector<8x32xf32> to vector<8xf32>
      %20 = vector.shape_cast %19 : vector<8xf32> to vector<8x1xf32>
      %cst_17 = arith.constant 3.200000e+01 : f32
      %21 = vector.broadcast %cst_17 : f32 to vector<8x1xf32>
      %22 = arith.divf %20, %21 : vector<8x1xf32>
      %23 = vector.broadcast %22 : vector<8x1xf32> to vector<8x32xf32>
      %24 = arith.subf %18, %23 : vector<8x32xf32>
      %25 = arith.mulf %24, %24 : vector<8x32xf32>
      %cst_18 = arith.constant dense<0.000000e+00> : vector<8xf32>
      %26 = vector.multi_reduction <add>, %25, %cst_18 [1] : vector<8x32xf32> to vector<8xf32>
      %27 = vector.shape_cast %26 : vector<8xf32> to vector<8x1xf32>
      %cst_19 = arith.constant 0.0322580636 : f32
      %28 = vector.broadcast %cst_19 : f32 to vector<8x1xf32>
      %29 = arith.mulf %27, %28 : vector<8x1xf32>
      %cst_20 = arith.constant 9.99999974E-6 : f32
      %30 = vector.broadcast %cst_20 : f32 to vector<8x1xf32>
      %31 = arith.addf %29, %30 : vector<8x1xf32>
      %32 = math.rsqrt %31 : vector<8x1xf32>
      %c0_21 = arith.constant 0 : index
      %c0_22 = arith.constant 0 : index
      %33 = vector.load %arg6[%c0_21, %c0_22] : memref<1x32xf32, #tpu.memory_space<vmem>>, vector<1x32xf32>
      %34 = vector.broadcast %33 : vector<1x32xf32> to vector<8x32xf32>
      %35 = arith.mulf %34, %24 : vector<8x32xf32>
      %36 = vector.broadcast %32 : vector<8x1xf32> to vector<8x32xf32>
      %37 = arith.mulf %35, %36 : vector<8x32xf32>
      %c0_23 = arith.constant 0 : index
      %c0_24 = arith.constant 0 : index
      %38 = vector.load %arg7[%c0_23, %c0_24] : memref<1x32xf32, #tpu.memory_space<vmem>>, vector<1x32xf32>
      %39 = vector.broadcast %38 : vector<1x32xf32> to vector<8x32xf32>
      %40 = arith.addf %37, %39 : vector<8x32xf32>
      %41 = arith.truncf %40 : vector<8x32xf32> to vector<8x32xbf16>
      %c0_25 = arith.constant 0 : index
      %c0_26 = arith.constant 0 : index
      %42 = vector.load %arg8[%c0_25, %c0_26] : memref<8x32xbf16, #tpu.memory_space<vmem>>, vector<8x32xbf16>
      tpu.vector_store %arg8[%c0_25, %c0_26], %41 {strides = array<i32>} : memref<8x32xbf16, #tpu.memory_space<vmem>>, vector<8x32xbf16>,
    } else {
    }
    return
  }
  func.func @transform_0(%arg0: i32, %arg1: i32) -> (i32, i32) {
    %c0_i32 = arith.constant 0 : i32
    return %arg0, %arg1 : i32, i32
  }
  func.func @transform_1(%arg0: i32, %arg1: i32) -> (i32, i32) {
    %c0_i32 = arith.constant 0 : i32
    %c0_i32_0 = arith.constant 0 : i32
    return %arg1, %c0_i32 : i32, i32
  }
  func.func @transform_2(%arg0: i32, %arg1: i32) -> (i32, i32) {
    %c0_i32 = arith.constant 0 : i32
    %c0_i32_0 = arith.constant 0 : i32
    %c0_i32_1 = arith.constant 0 : i32
    return %c0_i32, %c0_i32_0 : i32, i32
  }
  func.func @transform_3(%arg0: i32, %arg1: i32) -> (i32, i32) {
    %c0_i32 = arith.constant 0 : i32
    %c0_i32_0 = arith.constant 0 : i32
    return %arg0, %c0_i32 : i32, i32
  }
  func.func @transform_4(%arg0: i32, %arg1: i32) -> (i32, i32) {
    %c0_i32 = arith.constant 0 : i32
    %c0_i32_0 = arith.constant 0 : i32
    %c0_i32_1 = arith.constant 0 : i32
    return %c0_i32, %c0_i32_0 : i32, i32
  }
  func.func @transform_5(%arg0: i32, %arg1: i32) -> (i32, i32) {
    %c0_i32 = arith.constant 0 : i32
    %c0_i32_0 = arith.constant 0 : i32
    %c0_i32_1 = arith.constant 0 : i32
    return %c0_i32, %c0_i32_0 : i32, i32
  }
  func.func @transform_6(%arg0: i32, %arg1: i32) -> (i32, i32) {
    %c0_i32 = arith.constant 0 : i32
    %c0_i32_0 = arith.constant 0 : i32
    return %arg0, %c0_i32 : i32, i32
  }
}

module attributes {stable_mosaic.version = 11 : i64} {
  func.func @_ln_kernel(%arg0: i32, %arg1: memref<8x32xbf16, #tpu.memory_space<vmem>>, %arg2: memref<1x32xf32, #tpu.memory_space<vmem>>, %arg3: memref<1x32xf32, #tpu.memory_space<vmem>>, %arg4: memref<8x32xbf16, #tpu.memory_space<vmem>>) attributes {dimension_semantics = [#tpu.dimension_semantics<parallel>], iteration_bounds = array<i64: 2>, scalar_prefetch = 0 : i64, scratch_operands = 0 : i64, tpu.core_type = #tpu.core_type<tc>, window_params = [{transform_indices = @transform_0, window_bounds = array<i64: 8, 32>}, {pipeline_mode = #tpu.pipeline_mode<synchronous>, transform_indices = @transform_1, window_bounds = array<i64: 1, 32>}, {pipeline_mode = #tpu.pipeline_mode<synchronous>, transform_indices = @transform_2, window_bounds = array<i64: 1, 32>}, {transform_indices = @transform_3, window_bounds = array<i64: 8, 32>}]} {
    %c0 = arith.constant 0 : index
    %c0_0 = arith.constant 0 : index
    %0 = vector.load %arg1[%c0, %c0_0] : memref<8x32xbf16, #tpu.memory_space<vmem>>, vector<8x32xbf16>
    %1 = arith.extf %0 : vector<8x32xbf16> to vector<8x32xf32>
    %cst = arith.constant dense<0.000000e+00> : vector<8xf32>
    %2 = vector.multi_reduction <add>, %1, %cst [1] : vector<8x32xf32> to vector<8xf32>
    %3 = vector.shape_cast %2 : vector<8xf32> to vector<8x1xf32>
    %cst_1 = arith.constant 3.200000e+01 : f32
    %4 = vector.broadcast %cst_1 : f32 to vector<8x1xf32>
    %5 = arith.divf %3, %4 : vector<8x1xf32>
    %6 = vector.broadcast %5 : vector<8x1xf32> to vector<8x32xf32>
    %7 = arith.subf %1, %6 : vector<8x32xf32>
    %8 = arith.mulf %7, %7 : vector<8x32xf32>
    %cst_2 = arith.constant dense<0.000000e+00> : vector<8xf32>
    %9 = vector.multi_reduction <add>, %8, %cst_2 [1] : vector<8x32xf32> to vector<8xf32>
    %10 = vector.shape_cast %9 : vector<8xf32> to vector<8x1xf32>
    %cst_3 = arith.constant 0.0322580636 : f32
    %11 = vector.broadcast %cst_3 : f32 to vector<8x1xf32>
    %12 = arith.mulf %10, %11 : vector<8x1xf32>
    %cst_4 = arith.constant 9.99999974E-6 : f32
    %13 = vector.broadcast %cst_4 : f32 to vector<8x1xf32>
    %14 = arith.addf %12, %13 : vector<8x1xf32>
    %15 = math.rsqrt %14 : vector<8x1xf32>
    %c0_5 = arith.constant 0 : index
    %c0_6 = arith.constant 0 : index
    %16 = vector.load %arg2[%c0_5, %c0_6] : memref<1x32xf32, #tpu.memory_space<vmem>>, vector<1x32xf32>
    %17 = vector.broadcast %16 : vector<1x32xf32> to vector<8x32xf32>
    %18 = arith.mulf %17, %7 : vector<8x32xf32>
    %19 = vector.broadcast %15 : vector<8x1xf32> to vector<8x32xf32>
    %20 = arith.mulf %18, %19 : vector<8x32xf32>
    %c0_7 = arith.constant 0 : index
    %c0_8 = arith.constant 0 : index
    %21 = vector.load %arg3[%c0_7, %c0_8] : memref<1x32xf32, #tpu.memory_space<vmem>>, vector<1x32xf32>
    %22 = vector.broadcast %21 : vector<1x32xf32> to vector<8x32xf32>
    %23 = arith.addf %20, %22 : vector<8x32xf32>
    %24 = arith.truncf %23 : vector<8x32xf32> to vector<8x32xbf16>
    %c0_9 = arith.constant 0 : index
    %c0_10 = arith.constant 0 : index
    %25 = vector.load %arg4[%c0_9, %c0_10] : memref<8x32xbf16, #tpu.memory_space<vmem>>, vector<8x32xbf16>
    tpu.vector_store %arg4[%c0_9, %c0_10], %24 {strides = array<i32>} : memref<8x32xbf16, #tpu.memory_space<vmem>>, vector<8x32xbf16>,
    return
  }
  func.func @transform_0(%arg0: i32) -> (i32, i32) {
    %c0_i32 = arith.constant 0 : i32
    %c0_i32_0 = arith.constant 0 : i32
    return %arg0, %c0_i32 : i32, i32
  }
  func.func @transform_1(%arg0: i32) -> (i32, i32) {
    %c0_i32 = arith.constant 0 : i32
    %c0_i32_0 = arith.constant 0 : i32
    %c0_i32_1 = arith.constant 0 : i32
    return %c0_i32, %c0_i32_0 : i32, i32
  }
  func.func @transform_2(%arg0: i32) -> (i32, i32) {
    %c0_i32 = arith.constant 0 : i32
    %c0_i32_0 = arith.constant 0 : i32
    %c0_i32_1 = arith.constant 0 : i32
    return %c0_i32, %c0_i32_0 : i32, i32
  }
  func.func @transform_3(%arg0: i32) -> (i32, i32) {
    %c0_i32 = arith.constant 0 : i32
    %c0_i32_0 = arith.constant 0 : i32
    return %arg0, %c0_i32 : i32, i32
  }
}

module attributes {stable_mosaic.version = 11 : i64} {
  func.func @_matmul_bias_kernel(%arg0: i32, %arg1: i32, %arg2: i32, %arg3: memref<8x32xbf16, #tpu.memory_space<vmem>>, %arg4: memref<32x64xbf16, #tpu.memory_space<vmem>>, %arg5: memref<1x64xf32, #tpu.memory_space<vmem>>, %arg6: memref<8x64xf32, #tpu.memory_space<vmem>>, %arg7: memref<8x64xf32, #tpu.memory_space<vmem>>) attributes {dimension_semantics = [#tpu.dimension_semantics<parallel>, #tpu.dimension_semantics<parallel>, #tpu.dimension_semantics<arbitrary>], iteration_bounds = array<i64: 2, 1, 1>, scalar_prefetch = 0 : i64, scratch_operands = 1 : i64, tpu.core_type = #tpu.core_type<tc>, window_params = [{transform_indices = @transform_0, window_bounds = array<i64: 8, 32>}, {transform_indices = @transform_1, window_bounds = array<i64: 32, 64>}, {transform_indices = @transform_2, window_bounds = array<i64: 1, 64>}, {transform_indices = @transform_3, window_bounds = array<i64: 8, 64>}]} {
    %c0_i32 = arith.constant 0 : i32
    %0 = arith.cmpi eq, %arg2, %c0_i32 : i32
    %1 = arith.extui %0 : i1 to i32
    %c0_i32_0 = arith.constant 0 : i32
    %2 = arith.cmpi ne, %1, %c0_i32_0 : i32
    scf.if %2 {
      %cst_10 = arith.constant 0.000000e+00 : f32
      %12 = vector.broadcast %cst_10 : f32 to vector<8x64xf32>
      %c0_11 = arith.constant 0 : index
      %c0_12 = arith.constant 0 : index
      %13 = vector.load %arg7[%c0_11, %c0_12] : memref<8x64xf32, #tpu.memory_space<vmem>>, vector<8x64xf32>
      tpu.vector_store %arg7[%c0_11, %c0_12], %12 {strides = array<i32>} : memref<8x64xf32, #tpu.memory_space<vmem>>, vector<8x64xf32>,
    } else {
    }
    %c0 = arith.constant 0 : index
    %c0_1 = arith.constant 0 : index
    %3 = vector.load %arg7[%c0, %c0_1] : memref<8x64xf32, #tpu.memory_space<vmem>>, vector<8x64xf32>
    %c0_2 = arith.constant 0 : index
    %c0_3 = arith.constant 0 : index
    %4 = vector.load %arg3[%c0_2, %c0_3] : memref<8x32xbf16, #tpu.memory_space<vmem>>, vector<8x32xbf16>
    %c0_4 = arith.constant 0 : index
    %c0_5 = arith.constant 0 : index
    %5 = vector.load %arg4[%c0_4, %c0_5] : memref<32x64xbf16, #tpu.memory_space<vmem>>, vector<32x64xbf16>
    %cst = arith.constant dense<0.000000e+00> : vector<8x64xf32>
    %6 = tpu.matmul %4, %5, %cst {dimension_numbers = #tpu.dot_dimension_numbers<[1], [0], [0], [1], [0, 0, 1, 1], [], []>} : vector<8x32xbf16>, vector<32x64xbf16>, vector<8x64xf32> -> vector<8x64xf32>
    %7 = arith.addf %3, %6 : vector<8x64xf32>
    %c0_6 = arith.constant 0 : index
    %c0_7 = arith.constant 0 : index
    %8 = vector.load %arg7[%c0_6, %c0_7] : memref<8x64xf32, #tpu.memory_space<vmem>>, vector<8x64xf32>
    tpu.vector_store %arg7[%c0_6, %c0_7], %7 {strides = array<i32>} : memref<8x64xf32, #tpu.memory_space<vmem>>, vector<8x64xf32>,
    %c0_i32_8 = arith.constant 0 : i32
    %9 = arith.cmpi eq, %arg2, %c0_i32_8 : i32
    %10 = arith.extui %9 : i1 to i32
    %c0_i32_9 = arith.constant 0 : i32
    %11 = arith.cmpi ne, %10, %c0_i32_9 : i32
    scf.if %11 {
      %c0_10 = arith.constant 0 : index
      %c0_11 = arith.constant 0 : index
      %12 = vector.load %arg7[%c0_10, %c0_11] : memref<8x64xf32, #tpu.memory_space<vmem>>, vector<8x64xf32>
      %c0_12 = arith.constant 0 : index
      %c0_13 = arith.constant 0 : index
      %13 = vector.load %arg5[%c0_12, %c0_13] : memref<1x64xf32, #tpu.memory_space<vmem>>, vector<1x64xf32>
      %14 = vector.broadcast %13 : vector<1x64xf32> to vector<8x64xf32>
      %15 = arith.addf %12, %14 : vector<8x64xf32>
      %c0_14 = arith.constant 0 : index
      %c0_15 = arith.constant 0 : index
      %16 = vector.load %arg6[%c0_14, %c0_15] : memref<8x64xf32, #tpu.memory_space<vmem>>, vector<8x64xf32>
      tpu.vector_store %arg6[%c0_14, %c0_15], %15 {strides = array<i32>} : memref<8x64xf32, #tpu.memory_space<vmem>>, vector<8x64xf32>,
    } else {
    }
    return
  }
  func.func @transform_0(%arg0: i32, %arg1: i32, %arg2: i32) -> (i32, i32) {
    %c0_i32 = arith.constant 0 : i32
    return %arg0, %arg2 : i32, i32
  }
  func.func @transform_1(%arg0: i32, %arg1: i32, %arg2: i32) -> (i32, i32) {
    %c0_i32 = arith.constant 0 : i32
    return %arg2, %arg1 : i32, i32
  }
  func.func @transform_2(%arg0: i32, %arg1: i32, %arg2: i32) -> (i32, i32) {
    %c0_i32 = arith.constant 0 : i32
    %c0_i32_0 = arith.constant 0 : i32
    return %c0_i32, %arg1 : i32, i32
  }
  func.func @transform_3(%arg0: i32, %arg1: i32, %arg2: i32) -> (i32, i32) {
    %c0_i32 = arith.constant 0 : i32
    return %arg0, %arg1 : i32, i32
  }
}

</mosaic_0001>

<bundles_post_ra>
// kernel: forward.14
= control target key start
LH: loop header
LB: loop body
LE: loop exit
PB: predicated region body
PF: predicated region fallthrough
CT: control target
= control target key end

     0   :  { %s639_s21 = smov 0   ;;  %s641_s22 = smov 0   ;;  %s700_s0 = inlined_call_operand.vmem [shape: bf16[16,32], index: 0, kind: input, shape index: {}]   ;;  %s701_s1 = inlined_call_operand.vmem [shape: bf16[32,32], index: 1, kind: input, shape index: {}]   ;;  %s702_s2 = inlined_call_operand.vmem [shape: f32[1,32], index: 2, kind: input, shape index: {}]   ;;  %s703_s3 = inlined_call_operand.vmem [shape: bf16[16,32], index: 3, kind: input, shape index: {}]   ;;  %s704_s4 = inlined_call_operand.vmem [shape: f32[1,32], index: 4, kind: input, shape index: {}]   ;;  %s705_s5 = inlined_call_operand.vmem [shape: f32[1,32], index: 5, kind: input, shape index: {}]   ;;  %s706_s6 = inlined_call_operand.vmem [shape: bf16[16,32], index: 6, kind: output, shape index: {}]  }
   0x1   :  { %s643_s23 = smov 0  }
   0x2 LB: > { %s28_s24 = sadd.s32 1, %s596_s22  ;;  %p525_p0 = scmp.ge.s32.totalorder %s600_s23, 1  ;;  %s600_s23 = sphi %s643_s23, %s16_s23   ;;  %s596_s22 = sphi %s641_s22, %s708_s22   ;;  %s592_s21 = sphi %s639_s21, %s707_s21  }
   0x3   : > { %p30_p1 = scmp.ge.s32.totalorder %s28_s24, 2  ;;  %p248_p2 = scmp.lt.s32.totalorder %s600_s23, 3 }
   0x5   : > { %s710_s24 = smov (%p30_p1, %s28_s24), 0  ;;  %p249_p3 = pnand %p525_p0, %p248_p2 }
   0x6   : > { %v574_v0 = vld [vmem:[%s701_s1] sm:$0xff] (!%p249_p3)   ;;  %v602_v1 = vmov (!%p249_p3), 0.0   ;;  %v575_v2 = vld [vmem:[%s701_s1 + $0x8] sm:$0xff] (!%p249_p3)   ;;  %vm603_vm0 = vmmov (!%p249_p3), 0   ;;  %p288_p4 = scmp.lt.s32.totalorder (!%p249_p3), %s592_s21, 1  ;;  %vm314_vm1 = vcmask (!%p249_p3), 261120  }
   0x7   : > { %252 = sbr.rel (%p249_p3) target bundleno = 558 (0x22e), region = 44  ;;  %540 = vmatprep.subr.bf16.mxu0 (!%p249_p3), %v602_v1  ;;  %544 = vmatprep.mubr.msk.bf16.mxu0 (!%p249_p3), %vm603_vm0, %v602_v1  ;;  %315 = vst.msk [vmem:[#allocation2] sm:$0xff] (!%p249_p3), %vm314_vm1, %v602_v1  ;;  %v532_v11 = vld [vmem:[%s702_s2] ss:$0 sm:$0xff] (!%p249_p3)  ;;  %vm426_vm2 = vcmask (!%p249_p3), 257024  }
   0x8   : > { %541 = vmatpush3.bf16.msra.mxu0 (!%p249_p3), %v574_v0  ;;  %v533_v25 = vld [vmem:[%s704_s4] ss:$0 sm:$0xff] (!%p249_p3) }
   0x9   : > { %542 = vmatprep.subr.bf16.mxu0 (!%p249_p3), %v602_v1  ;;  %v534_v28 = vld [vmem:[%s705_s5] ss:$0 sm:$0xff] (!%p249_p3) }
   0xc   : > { %543 = vmatpush3.bf16.msra.mxu0 (!%p249_p3), %v575_v2 }
   0xe   : > { %s712_s21 = smov (!%p288_p4, %s592_s21), 1  ;;  %v316_v4 = vld [vmem:[#allocation2] sm:$0xff] }
   0xf   : > { %s664_s29 = sshll.u32 %s712_s21, 2 }
  0x10   : > { %s294_s8 = scalar_lea.vmem %s700_s0, %s664_s29  ;;  %s304_s11 = scalar_lea.vmem %s703_s3, %s664_s29 }
  0x11   : > { %v317_v3 = vld [vmem:[%s294_s8] sm:$0xf]  ;;  %s308_s20 = scalar_lea.vmem %s706_s6, %s664_s29 }
  0x12   : > { %545 = vmatmul.mubr.msk.bf16.vlgmr.msra.gmra.mrb[0].mxu0 %vm314_vm1, %v317_v3  ;;  %v392_v10 = vld [vmem:[%s304_s11] sm:$0xf] }
  0x13   : > { %v393_v12 = vunpack.c.l.bf16 %v392_v10 }
  0xe5   : > { %v372_v5 = vpop.f32.mrb[0].mxu0 }
  0xe6   : > { %v378_v6 = vadd.f32 %v372_v5, %v316_v4  ;;  %v546_v7 = vpop.f32.mrb[1].mxu0 }
  0xe7   : > { %v375_v8 = vpop.f32.mrb[2].mxu0 }
  0xe8   : > { %379 = vst.msk [vmem:[#allocation2] sm:$0xff] %vm314_vm1, %v378_v6  ;;  %v547_v9 = vpop.f32.mrb[3].mxu0 }
  0xef   : > { %v383_v13 = vld [vmem:[#allocation2] sm:$0xff] }
  0xf0   : > { %v391_v14 = vadd.f32 %v532_v11, %v383_v13 }
  0xf2   : > { %v394_v15 = vadd.f32 %v393_v12, %v391_v14 }
  0xf4   : > { %v395_v16 = vsel %vm314_vm1, %v394_v15, 0.0 }
  0xf5   : > { %396 = vadd.xlane.f32.xlu0 %v395_v16 }
 0x182   : > { %v397_v17 = vpop.xlane.xlu0 %396 }
 0x183   : > { %v399_v18 = vmul.f32 0.03125, %v397_v17 }
 0x185   : > { %v400_v19 = vsub.f32 %v394_v15, %v399_v18 }
 0x187   : > { %v401_v20 = vmul.f32 %v400_v19, %v400_v19  ;;  %v415_v26 = vmul.f32 %v533_v25, %v400_v19 }
 0x189   : > { %v402_v21 = vsel %vm314_vm1, %v401_v20, 0.0 }
 0x18a   : > { %403 = vadd.xlane.f32.xlu0 %v402_v21 }
 0x217   : > { %v404_v22 = vpop.xlane.xlu0 %403 }
 0x218   : > { %v405_v23 = vmul.f32 0.032258064, %v404_v22 }
 0x21a   : > { %v406_v24 = vadd.f32 1e-05, %v405_v23 }
 0x21c   : > { %576 = vrsqrt.f32 %v406_v24 }
 0x226   : > { %v577_v27 = vpop.eup %576 }
 0x227   : > { %v416_v29 = vmul.f32 %v577_v27, %v415_v26 }
 0x229   : > { %v424_v30 = vadd.f32 %v534_v28, %v416_v29 }
 0x22b   : > { %v425_v31 = vpack.c.bf16 %v424_v30, %v424_v30 }
 0x22d   : > { %427 = vst.msk [vmem:[%s308_s20] sm:$0xf] %vm426_vm2, %v425_v31 }
 0x22e PF: > { %s16_s23 = sadd.s32 1, %s600_s23   ;;  %s707_s21 = smov %s596_s22 }
 0x22f   : > { %p13_p5 = scmp.ge.s32.totalorder %s16_s23, 4   ;;  %s708_s22 = smov %s710_s24 }
 0x231   :  { %15 = sbr.rel (!%p13_p5) target bundleno = 2 (0x2), region = 88 }

// kernel: forward.15
= control target key start
LH: loop header
LB: loop body
LE: loop exit
PB: predicated region body
PF: predicated region fallthrough
CT: control target
= control target key end

     0   :  { %s547_s12 = smov 0   ;;  %s549_s13 = smov 0   ;;  %s591_s0 = inlined_call_operand.vmem [shape: bf16[16,32], index: 0, kind: input, shape index: {}]   ;;  %s592_s1 = inlined_call_operand.vmem [shape: bf16[32,64], index: 1, kind: input, shape index: {}]   ;;  %s593_s2 = inlined_call_operand.vmem [shape: f32[1,64], index: 2, kind: input, shape index: {}]   ;;  %s594_s3 = inlined_call_operand.vmem [shape: bf16[16,64], index: 3, kind: output, shape index: {}]  }
   0x1   :  { %s551_s14 = smov 0  }
   0x2 LB: > { %s32_s15 = sadd.s32 1, %s519_s13  ;;  %p453_p0 = scmp.ge.s32.totalorder %s523_s14, 1  ;;  %s523_s14 = sphi %s551_s14, %s13_s14   ;;  %s519_s13 = sphi %s549_s13, %s596_s13   ;;  %s515_s12 = sphi %s547_s12, %s595_s12  }
   0x3   : > { %p34_p1 = scmp.ge.s32.totalorder %s32_s15, 2  ;;  %p186_p2 = scmp.lt.s32.totalorder %s523_s14, 3 }
   0x5   : > { %s598_s15 = smov (%p34_p1, %s32_s15), 0  ;;  %p187_p3 = pnand %p453_p0, %p186_p2 }
   0x6   : > { %vm256_vm0 = vcmask (!%p187_p3), 523264   ;;  %v525_v0 = vmov (!%p187_p3), 0.0   ;;  %v499_v1 = vld [vmem:[%s592_s1] sm:$0xff] (!%p187_p3)   ;;  %vm526_vm1 = vmmov (!%p187_p3), 0   ;;  %p225_p4 = scmp.lt.s32.totalorder (!%p187_p3), %s515_s12, 1  ;;  %v500_v2 = vld [vmem:[%s592_s1 + $0x8] sm:$0xff] (!%p187_p3)  }
   0x7   : > { %190 = sbr.rel (%p187_p3) target bundleno = 247 (0xf7), region = 32  ;;  %257 = vst.msk [vmem:[#allocation2] sm:$0xff] (!%p187_p3), %vm256_vm0, %v525_v0  ;;  %465 = vmatprep.subr.bf16.mxu0 (!%p187_p3), %v525_v0  ;;  %469 = vmatprep.mubr.msk.bf16.mxu0 (!%p187_p3), %vm526_vm1, %v525_v0  ;;  %vm276_vm2 = vcmask (!%p187_p3), 261120   ;;  %v459_v10 = vld [vmem:[%s593_s2] ss:$0 sm:$0xff] (!%p187_p3)  ;;  %vm337_vm3 = vcmask (!%p187_p3), 519168  }
   0x8   : > { %466 = vmatpush3.bf16.msra.mxu0 (!%p187_p3), %v499_v1 }
   0x9   : > { %467 = vmatprep.subr.bf16.mxu0 (!%p187_p3), %v525_v0 }
   0xc   : > { %468 = vmatpush3.bf16.msra.mxu0 (!%p187_p3), %v500_v2 }
   0xe   : > { %s600_s12 = smov (!%p225_p4, %s515_s12), 1  ;;  %v258_v4 = vld [vmem:[#allocation2] sm:$0xff] }
   0xf   : > { %s454_s20 = sshll.u32 %s600_s12, 2 }
  0x10   : > { %s231_s23 = scalar_lea.vmem %s591_s0, %s454_s20  ;;  %s250_s28 = scalar_lea.vmem %s594_s3, %s454_s20 }
  0x11   : > { %v259_v3 = vld [vmem:[%s231_s23] sm:$0xf] }
  0x12   : > { %470 = vmatmul.mubr.msk.bf16.vlgmr.msra.gmra.mrb[0].mxu0 %vm276_vm2, %v259_v3 }
  0xe5   : > { %v314_v5 = vpop.f32.mrb[0].mxu0 }
  0xe6   : > { %v320_v6 = vadd.f32 %v314_v5, %v258_v4  ;;  %v471_v7 = vpop.f32.mrb[1].mxu0 }
  0xe7   : > { %v317_v8 = vpop.f32.mrb[2].mxu0 }
  0xe8   : > { %322 = vst.msk [vmem:[#allocation2] sm:$0xff] %vm256_vm0, %v320_v6  ;;  %v472_v9 = vpop.f32.mrb[3].mxu0 }
  0xef   : > { %v326_v11 = vld [vmem:[#allocation2] sm:$0xff] }
  0xf0   : > { %v334_v12 = vadd.f32 %v459_v10, %v326_v11 }
  0xf2   : > { %v335_v13 = vmax.f32 %v334_v12, 0.0 }
  0xf4   : > { %v336_v14 = vpack.c.bf16 %v335_v13, %v335_v13 }
  0xf6   : > { %338 = vst.msk [vmem:[%s250_s28] sm:$0xf] %vm337_vm3, %v336_v14 }
  0xf7 PF: > { %s13_s14 = sadd.s32 1, %s523_s14   ;;  %s595_s12 = smov %s519_s13 }
  0xf8   : > { %p10_p5 = scmp.ge.s32.totalorder %s13_s14, 4   ;;  %s596_s13 = smov %s598_s15 }
  0xfa   :  { %12 = sbr.rel (!%p10_p5) target bundleno = 2 (0x2), region = 76 }

// kernel: forward.12
= control target key start
LH: loop header
LB: loop body
LE: loop exit
PB: predicated region body
PF: predicated region fallthrough
CT: control target
= control target key end

     0   :  { %s546_s12 = smov 0   ;;  %s548_s13 = smov 0   ;;  %s590_s0 = inlined_call_operand.vmem [shape: bf16[16,32], index: 0, kind: input, shape index: {}]   ;;  %s591_s1 = inlined_call_operand.vmem [shape: bf16[32,96], index: 1, kind: input, shape index: {}]   ;;  %s592_s2 = inlined_call_operand.vmem [shape: f32[1,96], index: 2, kind: input, shape index: {}]   ;;  %s593_s3 = inlined_call_operand.vmem [shape: bf16[16,96], index: 3, kind: output, shape index: {}]  }
   0x1   :  { %s550_s14 = smov 0  }
   0x2 LB: > { %s32_s15 = sadd.s32 1, %s518_s13  ;;  %p452_p0 = scmp.ge.s32.totalorder %s522_s14, 1  ;;  %s522_s14 = sphi %s550_s14, %s13_s14   ;;  %s518_s13 = sphi %s548_s13, %s595_s13   ;;  %s514_s12 = sphi %s546_s12, %s594_s12  }
   0x3   : > { %p34_p1 = scmp.ge.s32.totalorder %s32_s15, 2  ;;  %p186_p2 = scmp.lt.s32.totalorder %s522_s14, 3 }
   0x5   : > { %s597_s15 = smov (%p34_p1, %s32_s15), 0  ;;  %p187_p3 = pnand %p452_p0, %p186_p2 }
   0x6   : > { %vm256_vm0 = vcmask (!%p187_p3), 785408   ;;  %v524_v0 = vmov (!%p187_p3), 0.0   ;;  %v498_v1 = vld [vmem:[%s591_s1] sm:$0xff] (!%p187_p3)   ;;  %vm525_vm1 = vmmov (!%p187_p3), 0   ;;  %p225_p4 = scmp.lt.s32.totalorder (!%p187_p3), %s514_s12, 1  ;;  %v499_v2 = vld [vmem:[%s591_s1 + $0x8] sm:$0xff] (!%p187_p3)  }
   0x7   : > { %190 = sbr.rel (%p187_p3) target bundleno = 245 (0xf5), region = 32  ;;  %257 = vst.msk [vmem:[#allocation2] sm:$0xff] (!%p187_p3), %vm256_vm0, %v524_v0  ;;  %464 = vmatprep.subr.bf16.mxu0 (!%p187_p3), %v524_v0  ;;  %468 = vmatprep.mubr.msk.bf16.mxu0 (!%p187_p3), %vm525_vm1, %v524_v0  ;;  %vm276_vm2 = vcmask (!%p187_p3), 261120   ;;  %v458_v10 = vld [vmem:[%s592_s2] ss:$0 sm:$0xff] (!%p187_p3)  ;;  %vm336_vm3 = vcmask (!%p187_p3), 781312  }
   0x8   : > { %465 = vmatpush3.bf16.msra.mxu0 (!%p187_p3), %v498_v1 }
   0x9   : > { %466 = vmatprep.subr.bf16.mxu0 (!%p187_p3), %v524_v0 }
   0xc   : > { %467 = vmatpush3.bf16.msra.mxu0 (!%p187_p3), %v499_v2 }
   0xe   : > { %s599_s12 = smov (!%p225_p4, %s514_s12), 1  ;;  %v258_v4 = vld [vmem:[#allocation2] sm:$0xff] }
   0xf   : > { %s453_s20 = sshll.u32 %s599_s12, 2 }
  0x10   : > { %s231_s23 = scalar_lea.vmem %s590_s0, %s453_s20  ;;  %s250_s28 = scalar_lea.vmem %s593_s3, %s453_s20 }
  0x11   : > { %v259_v3 = vld [vmem:[%s231_s23] sm:$0xf] }
  0x12   : > { %469 = vmatmul.mubr.msk.bf16.vlgmr.msra.gmra.mrb[0].mxu0 %vm276_vm2, %v259_v3 }
  0xe5   : > { %v314_v5 = vpop.f32.mrb[0].mxu0 }
  0xe6   : > { %v320_v6 = vadd.f32 %v314_v5, %v258_v4  ;;  %v470_v7 = vpop.f32.mrb[1].mxu0 }
  0xe7   : > { %v317_v8 = vpop.f32.mrb[2].mxu0 }
  0xe8   : > { %322 = vst.msk [vmem:[#allocation2] sm:$0xff] %vm256_vm0, %v320_v6  ;;  %v471_v9 = vpop.f32.mrb[3].mxu0 }
  0xef   : > { %v326_v11 = vld [vmem:[#allocation2] sm:$0xff] }
  0xf0   : > { %v334_v12 = vadd.f32 %v458_v10, %v326_v11 }
  0xf2   : > { %v335_v13 = vpack.c.bf16 %v334_v12, %v334_v12 }
  0xf4   : > { %337 = vst.msk [vmem:[%s250_s28] sm:$0xf] %vm336_vm3, %v335_v13 }
  0xf5 PF: > { %s13_s14 = sadd.s32 1, %s522_s14   ;;  %s594_s12 = smov %s518_s13 }
  0xf6   : > { %p10_p5 = scmp.ge.s32.totalorder %s13_s14, 4   ;;  %s595_s13 = smov %s597_s15 }
  0xf8   :  { %12 = sbr.rel (!%p10_p5) target bundleno = 2 (0x2), region = 76 }

// kernel: forward.13
= control target key start
LH: loop header
LB: loop body
LE: loop exit
PB: predicated region body
PF: predicated region fallthrough
CT: control target
= control target key end

     0   :  { %s1392_s6 = smov 0   ;;  %s1586_s0 = inlined_call_operand.vmem [shape: bf16[16,96], index: 0, kind: input, shape index: {}]   ;;  %s1587_s1 = inlined_call_operand.vmem [shape: bf16[16,32], index: 1, kind: output, shape index: {}]  }
   0x1 LB: > { %s1115_s7 = sadd.s32 4294967295, %s1348_s6   ;;  %p1119_p0 = scmp.ge.s32.totalorder %s1348_s6, 1  ;;  %s1348_s6 = sphi %s1392_s6, %s11_s6  }
   0x2   : > { %p86_p1 = scmp.lt.s32.totalorder %s1348_s6, 3 }
   0x4   : > { %p87_p2 = pnand %p1119_p0, %p86_p1 }
   0x5   : > { %p104_p3 = scmp.lt.s32.totalorder (!%p87_p2), %s1115_s7, 1  ;;  %v1350_v0 = vmov (!%p87_p2), 0.0   ;;  %vm1351_vm0 = vmmov (!%p87_p2), 0   ;;  %s1352_s12 = smov (!%p87_p2), 96   ;;  %vm124_vm1 = vcmask (!%p87_p2), 31744   ;;  %v113_v5 = vlaneseq (!%p87_p2) }
   0x6   : > { %90 = sbr.rel (%p87_p2) target bundleno = 1637 (0x665), region = 24  ;;  %1173 = vmatprep.subr.bf16.mxu0 (!%p87_p2), %v1350_v0  ;;  %1175 = vmatprep.mubr.msk.bf16.mxu0 (!%p87_p2), %vm1351_vm0, %v1350_v0  ;;  %s1353_s13 = smov (!%p87_p2), 64   ;;  %vm173_vm3 = vcmask (!%p87_p2), 64512   ;;  %vm191_vm4 = vcmask (!%p87_p2), 1043456   ;;  %vm1049_vm5 = vcmask (!%p87_p2), 97280   ;;  %vm1051_vm6 = vcmask (!%p87_p2), 130048  }
   0x7   : > { %1179 = vmatprep.subr.bf16.mxu1 (!%p87_p2), %v1350_v0  ;;  %1181 = vmatprep.mubr.msk.bf16.mxu1 (!%p87_p2), %vm1351_vm0, %v1350_v0  ;;  %s1354_s14 = smov (!%p87_p2), 92   ;;  %v114_v6 = vshrl.u32 (!%p87_p2), %v113_v5, 7  ;;  %v116_v7 = vand.u32 (!%p87_p2), 127, %v113_v5  ;;  %s1355_s15 = smov (!%p87_p2), 84   ;;  %vm1053_vm7 = vcmask (!%p87_p2), 162816   ;;  %vm1055_vm8 = vcmask (!%p87_p2), 195584  }
   0x8   : > { %s1356_s16 = smov (!%p87_p2), 72   ;;  %s1357_s17 = smov (!%p87_p2), 68   ;;  %vm1057_vm9 = vcmask (!%p87_p2), 228352   ;;  %vm1060_vm10 = vcmask (!%p87_p2), 257024  }
   0x9   : > { %vm1424_vm2 = vcmp.le.s32.totalorder (!%p87_p2), %v116_v7, %v114_v6  ;;  %s1358_s18 = smov (!%p87_p2), 124   ;;  %s1359_s19 = smov (!%p87_p2), 88  }
   0xa   : > { %s1360_s20 = smov (!%p87_p2), 120   ;;  %s1361_s21 = smov (!%p87_p2), 116  }
   0xb   : > { %s1362_s22 = smov (!%p87_p2), 80   ;;  %s1363_s23 = smov (!%p87_p2), 112  }
   0xc   : > { %s1364_s24 = smov (!%p87_p2), 76   ;;  %s1365_s25 = smov (!%p87_p2), 108  }
   0xd   : > { %s1591_s7 = smov (!%p104_p3, %s1115_s7), 1  ;;  %s1366_s26 = smov 104  }
   0xe   : > { %s1120_s8 = sshll.u32 %s1591_s7, 2  ;;  %s1367_s27 = smov 100  }
   0xf   : > { %s107_s11 = scalar_lea.vmem %s1586_s0, %s1120_s8  ;;  %s1368_s28 = smov 56  }
  0x10   : > { %v118_v1 = vld [vmem:[%s107_s11] sm:$0xf]  ;;  %s1369_s29 = smov 60   ;;  %s1370_s30 = smov 52  }
  0x11   : > { %v1414_v2 = vcombine.low %v118_v1, %v118_v1  ;;  %s1371_s2 = smov 48   ;;  %s1372_s3 = smov 40  }
  0x12   : > { %s1373_s4 = smov 36   ;;  %s1374_s5 = smov 44  }
  0x13   : > { %122 = vrot.lane.b32.xlu0 %v1414_v2, %s1352_s12  ;;  %186 = vrot.lane.b32.xlu1 %v1414_v2, %s1353_s13  ;;  %s1375_s9 = smov 4   ;;  %s1376_s10 = smov 8  }
  0x14   : > { %s1377_s11 = smov 12   ;;  %s1378_s12 = smov 16  }
  0x15   : > { %s1379_s13 = smov 20  }
  0x17   : > { %237 = vrot.lane.b32.xlu1 %v1414_v2, %s1354_s14  ;;  %s1380_s14 = smov 24  }
  0x85   : > { %v123_v3 = vpop.permute.xlu0 %122  ;;  %v187_v16 = vpop.permute.xlu1 %186 }
  0x86   : > { %v129_v4 = vsel %vm124_vm1, %v123_v3, 0  ;;  %v193_v17 = vsel %vm191_vm4, %v187_v16, 0 }
  0x87   : > { %1174 = vmatpush3.bf16.xpose.msra.mxu0 %v129_v4  ;;  %1180 = vmatpush3.bf16.msra.mxu1 %v193_v17 }
  0x88   : > { %1191 = vmatprep.subr.bf16.mxu0 %v1350_v0  ;;  %1185 = vmatprep.subr.bf16.mxu1 %v1350_v0 }
  0x89   : > { %v238_v23 = vpop.permute.xlu1 %237 }
  0x8a   : > { %v243_v30 = vsel %vm124_vm1, %v238_v23, 0 }
  0x8e   : > { %1176 = vmatmul.mubr.msk.bf16.vlgmr.msra.gmra.mrb[0].mxu0 %vm124_vm1, %v118_v1 }
  0x8f   : > { %1193 = vmatprep.mubr.msk.bf16.mxu0 %vm1351_vm0, %v1350_v0 }
 0x161   : > { %v165_v8 = vpop.f32.mrb[0].mxu0 }
 0x162   : > { %v171_v10 = vmul.f32 0.25, %v165_v8  ;;  %v1177_v11 = vpop.f32.mrb[1].mxu0 }
 0x163   : > { %v168_v12 = vpop.f32.mrb[2].mxu0 }
 0x164   : > { %v1178_v13 = vpop.f32.mrb[3].mxu0  ;;  %v172_v14 = vsel %vm1424_vm2, %v171_v10, -inf }
 0x165   : > { %v174_v15 = vsel %vm173_vm3, %v172_v14, -inf }
 0x166   : > { %175 = vmax.xlane.f32.xlu0 %v174_v15 }
 0x17c   : > { %461 = vrot.lane.b32.xlu0 %v1414_v2, %s1355_s15  ;;  %s1381_s15 = smov 28  }
 0x180   : > { %797 = vrot.lane.b32.xlu0 %v1414_v2, %s1356_s16 }
 0x184   : > { %909 = vrot.lane.b32.xlu0 %v1414_v2, %s1357_s17 }
 0x1f3   : > { %v176_v18 = vpop.xlane.xlu0 %175 }
 0x1f4   : > { %v177_v19 = vsub.f32 %v172_v14, %v176_v18 }
 0x1f6   : > { %v178_v20 = vmul.f32 1.442695, %v177_v19 }
 0x1f7   : > { %v462_v34 = vpop.permute.xlu0 %461 }
 0x1f8   : > { %1310 = vpow2.f32 %v178_v20  ;;  %v467_v35 = vsel %vm124_vm1, %v462_v34, 0 }
 0x1fb   : > { %v798_v41 = vpop.permute.xlu0 %797 }
 0x1fc   : > { %v803_v43 = vsel %vm124_vm1, %v798_v41, 0 }
 0x1ff   : > { %v910_v44 = vpop.permute.xlu0 %909 }
 0x200   : > { %v915_v46 = vsel %vm124_vm1, %v910_v44, 0 }
 0x202   : > { %v1311_v21 = vpop.eup %1310 }
 0x203   : > { %v180_v22 = vsel %vm173_vm3, %v1311_v21, 0.0 }
 0x204   : > { %181 = vadd.xlane.f32.xlu1 %v180_v22 }
 0x215   : > { %235 = vrot.lane.b32.xlu1 %v1414_v2, %s1358_s18  ;;  %s111_s18 = scalar_lea.vmem %s1587_s1, %s1120_s8 }
 0x219   : > { %349 = vrot.lane.b32.xlu1 %v1414_v2, %s1359_s19 }
 0x21d   : > { %347 = vrot.lane.b32.xlu1 %v1414_v2, %s1360_s20 }
 0x221   : > { %459 = vrot.lane.b32.xlu1 %v1414_v2, %s1361_s21 }
 0x225   : > { %573 = vrot.lane.b32.xlu1 %v1414_v2, %s1362_s22 }
 0x229   : > { %571 = vrot.lane.b32.xlu1 %v1414_v2, %s1363_s23 }
 0x22d   : > { %685 = vrot.lane.b32.xlu1 %v1414_v2, %s1364_s24 }
 0x231   : > { %683 = vrot.lane.b32.xlu1 %v1414_v2, %s1365_s25 }
 0x235   : > { %795 = vrot.lane.b32.xlu1 %v1414_v2, %s1366_s26 }
 0x239   : > { %907 = vrot.lane.b32.xlu1 %v1414_v2, %s1367_s27 }
 0x291   : > { %v182_v24 = vpop.xlane.xlu1 %181 }
 0x292   : > { %1312 = vrcp.f32 %v182_v24 }
 0x295   : > { %v236_v25 = vpop.permute.xlu1 %235 }
 0x299   : > { %v350_v29 = vpop.permute.xlu1 %349 }
 0x29a   : > { %v355_v32 = vsel %vm124_vm1, %v350_v29, 0 }
 0x29c   : > { %v1313_v26 = vpop.eup %1312 }
 0x29d   : > { %v184_v27 = vmul.f32 %v1313_v26, %v1311_v21  ;;  %v348_v31 = vpop.permute.xlu1 %347 }
 0x29f   : > { %v185_v28 = vpack.c.bf16 %v184_v27, %v184_v27 }
 0x2a1   : > { %1182 = vmatmul.mubr.msk.bf16.vlgmr.msra.gmra.mrb[0].mxu1 %vm173_vm3, %v185_v28  ;;  %v460_v33 = vpop.permute.xlu1 %459 }
 0x2a2   : > { %1186 = vmatpush3.bf16.xpose.msra.mxu1 %v243_v30  ;;  %1187 = vmatprep.mubr.msk.bf16.mxu1 %vm1351_vm0, %v1350_v0 }
 0x2a3   : > { %1197 = vmatprep.subr.bf16.mxu1 %v1350_v0 }
 0x2a5   : > { %v574_v36 = vpop.permute.xlu1 %573 }
 0x2a6   : > { %v579_v38 = vsel %vm124_vm1, %v574_v36, 0 }
 0x2a9   : > { %1188 = vmatmul.mubr.msk.bf16.vlgmr.msra.gmra.mrb[4].mxu1 %vm124_vm1, %v236_v25  ;;  %v572_v37 = vpop.permute.xlu1 %571 }
 0x2aa   : > { %1198 = vmatpush3.bf16.xpose.msra.mxu1 %v355_v32  ;;  %1199 = vmatprep.mubr.msk.bf16.mxu1 %vm1351_vm0, %v1350_v0 }
 0x2ab   : > { %1209 = vmatprep.subr.bf16.mxu1 %v1350_v0 }
 0x2ad   : > { %v686_v39 = vpop.permute.xlu1 %685 }
 0x2ae   : > { %v691_v40 = vsel %vm124_vm1, %v686_v39, 0 }
 0x2b1   : > { %1200 = vmatmul.mubr.msk.bf16.vlgmr.msra.gmra.mrb[8].mxu1 %vm124_vm1, %v348_v31  ;;  %v684_v42 = vpop.permute.xlu1 %683 }
 0x2b2   : > { %1210 = vmatpush3.bf16.xpose.msra.mxu1 %v467_v35  ;;  %1211 = vmatprep.mubr.msk.bf16.mxu1 %vm1351_vm0, %v1350_v0 }
 0x2b3   : > { %1221 = vmatprep.subr.bf16.mxu1 %v1350_v0 }
 0x2b5   : > { %v796_v45 = vpop.permute.xlu1 %795 }
 0x2b9   : > { %1212 = vmatmul.mubr.msk.bf16.vlgmr.msra.gmra.mrb[12].mxu1 %vm124_vm1, %v460_v33  ;;  %v908_v47 = vpop.permute.xlu1 %907 }
 0x2ba   : > { %1222 = vmatpush3.bf16.xpose.msra.mxu1 %v579_v38  ;;  %1223 = vmatprep.mubr.msk.bf16.mxu1 %vm1351_vm0, %v1350_v0 }
 0x2bb   : > { %1233 = vmatprep.subr.bf16.mxu1 %v1350_v0 }
 0x2c1   : > { %1224 = vmatmul.mubr.msk.bf16.vlgmr.msra.gmra.mrb[16].mxu1 %vm124_vm1, %v572_v37 }
 0x2c2   : > { %1234 = vmatpush3.bf16.xpose.msra.mxu1 %v691_v40  ;;  %1235 = vmatprep.mubr.msk.bf16.mxu1 %vm1351_vm0, %v1350_v0 }
 0x2c3   : > { %1245 = vmatprep.subr.bf16.mxu1 %v1350_v0 }
 0x2c9   : > { %1236 = vmatmul.mubr.msk.bf16.vlgmr.msra.gmra.mrb[20].mxu1 %vm124_vm1, %v684_v42 }
 0x2ca   : > { %1246 = vmatpush3.bf16.xpose.msra.mxu1 %v803_v43  ;;  %1247 = vmatprep.mubr.msk.bf16.mxu1 %vm1351_vm0, %v1350_v0 }
 0x2cb   : > { %1257 = vmatprep.subr.bf16.mxu1 %v1350_v0 }
 0x2d1   : > { %1248 = vmatmul.mubr.msk.bf16.vlgmr.msra.gmra.mrb[24].mxu1 %vm124_vm1, %v796_v45 }
 0x2d2   : > { %1258 = vmatpush3.bf16.xpose.msra.mxu1 %v915_v46  ;;  %1259 = vmatprep.mubr.msk.bf16.mxu1 %vm1351_vm0, %v1350_v0 }
 0x2d9   : > { %1260 = vmatmul.mubr.msk.bf16.vlgmr.msra.gmra.mrb[28].mxu1 %vm124_vm1, %v908_v47 }
 0x374   : > { %v1482_v48 = vpop.f32.mrb[0].mxu1 }
 0x375   : > { %v1183_v49 = vpop.f32.mrb[1].mxu1 }
 0x376   : > { %v232_v50 = vpop.f32.mrb[2].mxu1 }
 0x377   : > { %v1184_v51 = vpop.f32.mrb[3].mxu1 }
 0x37c   : > { %v279_v52 = vpop.f32.mrb[4].mxu1 }
 0x37d   : > { %v285_v53 = vmul.f32 0.25, %v279_v52  ;;  %v1189_v54 = vpop.f32.mrb[5].mxu1 }
 0x37e   : > { %v282_v55 = vpop.f32.mrb[6].mxu1 }
 0x37f   : > { %v1190_v56 = vpop.f32.mrb[7].mxu1  ;;  %v286_v57 = vsel %vm1424_vm2, %v285_v53, -inf }
 0x380   : > { %v287_v58 = vsel %vm173_vm3, %v286_v57, -inf }
 0x381   : > { %288 = vmax.xlane.f32.xlu0 %v287_v58 }
 0x384   : > { %v391_v59 = vpop.f32.mrb[8].mxu1 }
 0x385   : > { %v397_v60 = vmul.f32 0.25, %v391_v59  ;;  %v1201_v61 = vpop.f32.mrb[9].mxu1 }
 0x386   : > { %v394_v62 = vpop.f32.mrb[10].mxu1 }
 0x387   : > { %v1202_v63 = vpop.f32.mrb[11].mxu1  ;;  %v398_v1 = vsel %vm1424_vm2, %v397_v60, -inf }
 0x388   : > { %v399_v3 = vsel %vm173_vm3, %v398_v1, -inf }
 0x389   : > { %400 = vmax.xlane.f32.xlu1 %v399_v3 }
 0x38c   : > { %v503_v4 = vpop.f32.mrb[12].mxu1 }
 0x38d   : > { %v509_v5 = vmul.f32 0.25, %v503_v4  ;;  %v1213_v6 = vpop.f32.mrb[13].mxu1 }
 0x38e   : > { %v506_v7 = vpop.f32.mrb[14].mxu1 }
 0x38f   : > { %v1214_v8 = vpop.f32.mrb[15].mxu1  ;;  %v510_v10 = vsel %vm1424_vm2, %v509_v5, -inf }
 0x390   : > { %v511_v11 = vsel %vm173_vm3, %v510_v10, -inf }
 0x391   : > { %512 = vmax.xlane.f32.xlu0 %v511_v11 }
 0x394   : > { %v615_v12 = vpop.f32.mrb[16].mxu1 }
 0x395   : > { %v621_v13 = vmul.f32 0.25, %v615_v12  ;;  %v1225_v14 = vpop.f32.mrb[17].mxu1 }
 0x396   : > { %v618_v15 = vpop.f32.mrb[18].mxu1 }
 0x397   : > { %v1226_v16 = vpop.f32.mrb[19].mxu1  ;;  %v1495_v17 = vsel %vm1424_vm2, %v621_v13, -inf }
 0x398   : > { %v623_v18 = vsel %vm173_vm3, %v1495_v17, -inf }
 0x399   : > { %624 = vmax.xlane.f32.xlu0 %v623_v18 }
 0x39c   : > { %v727_v19 = vpop.f32.mrb[20].mxu1 }
 0x39d   : > { %v733_v20 = vmul.f32 0.25, %v727_v19  ;;  %v1237_v21 = vpop.f32.mrb[21].mxu1 }
 0x39e   : > { %v730_v22 = vpop.f32.mrb[22].mxu1 }
 0x39f   : > { %v1238_v23 = vpop.f32.mrb[23].mxu1  ;;  %v734_v24 = vsel %vm1424_vm2, %v733_v20, -inf }
 0x3a0   : > { %v735_v25 = vsel %vm173_vm3, %v734_v24, -inf }
 0x3a1   : > { %736 = vmax.xlane.f32.xlu1 %v735_v25 }
 0x3a4   : > { %v839_v26 = vpop.f32.mrb[24].mxu1 }
 0x3a5   : > { %v845_v27 = vmul.f32 0.25, %v839_v26  ;;  %v1249_v28 = vpop.f32.mrb[25].mxu1 }
 0x3a6   : > { %v842_v29 = vpop.f32.mrb[26].mxu1 }
 0x3a7   : > { %v846_v30 = vsel %vm1424_vm2, %v845_v27, -inf  ;;  %v1250_v31 = vpop.f32.mrb[27].mxu1 }
 0x3a8   : > { %v847_v32 = vsel %vm173_vm3, %v846_v30, -inf }
 0x3a9   : > { %848 = vmax.xlane.f32.xlu0 %v847_v32 }
 0x3ac   : > { %v951_v33 = vpop.f32.mrb[28].mxu1 }
 0x3ad   : > { %v1261_v34 = vpop.f32.mrb[29].mxu1  ;;  %v957_v37 = vmul.f32 0.25, %v951_v33 }
 0x3ae   : > { %v954_v35 = vpop.f32.mrb[30].mxu1 }
 0x3af   : > { %v1262_v36 = vpop.f32.mrb[31].mxu1  ;;  %v958_v38 = vsel %vm1424_vm2, %v957_v37, -inf }
 0x3b0   : > { %v959_v39 = vsel %vm173_vm3, %v958_v38, -inf }
 0x3b2   : > { %411 = vrot.lane.b32.xlu1 %v1414_v2, %s1368_s28 }
 0x3bf   : > { %299 = vrot.lane.b32.xlu0 %v1414_v2, %s1369_s29 }
 0x3d6   : > { %960 = vmax.xlane.f32.xlu1 %v959_v39 }
 0x40e   : > { %v289_v40 = vpop.xlane.xlu0 %288 }
 0x40f   : > { %v290_v41 = vsub.f32 %v286_v57, %v289_v40 }
 0x411   : > { %v291_v42 = vmul.f32 1.442695, %v290_v41 }
 0x413   : > { %1314 = vpow2.f32 %v291_v42 }
 0x416   : > { %v401_v43 = vpop.xlane.xlu1 %400 }
 0x417   : > { %v402_v44 = vsub.f32 %v398_v1, %v401_v43 }
 0x419   : > { %v403_v45 = vmul.f32 1.442695, %v402_v44 }
 0x41b   : > { %1316 = vpow2.f32 %v403_v45 }
 0x41d   : > { %v1315_v46 = vpop.eup %1314 }
 0x41e   : > { %v513_v47 = vpop.xlane.xlu0 %512  ;;  %v293_v49 = vsel %vm173_vm3, %v1315_v46, 0.0 }
 0x41f   : > { %v514_v50 = vsub.f32 %v510_v10, %v513_v47  ;;  %294 = vadd.xlane.f32.xlu0 %v293_v49 }
 0x421   : > { %v515_v51 = vmul.f32 1.442695, %v514_v50 }
 0x423   : > { %1318 = vpow2.f32 %v515_v51 }
 0x425   : > { %v1511_v9 = vpop.eup %1316 }
 0x426   : > { %v405_v52 = vsel %vm173_vm3, %v1511_v9, 0.0  ;;  %v625_v55 = vpop.xlane.xlu0 %624 }
 0x427   : > { %406 = vadd.xlane.f32.xlu1 %v405_v52  ;;  %v626_v59 = vsub.f32 %v1495_v17, %v625_v55 }
 0x429   : > { %v627_v61 = vmul.f32 1.442695, %v626_v59 }
 0x42b   : > { %1320 = vpow2.f32 %v627_v61 }
 0x42d   : > { %v1515_v53 = vpop.eup %1318 }
 0x42e   : > { %v517_v54 = vsel %vm173_vm3, %v1515_v53, 0.0  ;;  %v737_v60 = vpop.xlane.xlu1 %736 }
 0x42f   : > { %518 = vadd.xlane.f32.xlu0 %v517_v54  ;;  %v738_v62 = vsub.f32 %v734_v24, %v737_v60 }
 0x431   : > { %v739_v63 = vmul.f32 1.442695, %v738_v62 }
 0x432   : > { %v412_v7 = vpop.permute.xlu1 %411 }
 0x433   : > { %1322 = vpow2.f32 %v739_v63  ;;  %v417_v22 = vsel %vm191_vm4, %v412_v7, 0 }
 0x435   : > { %v1321_v4 = vpop.eup %1320 }
 0x436   : > { %v849_v56 = vpop.xlane.xlu0 %848  ;;  %v629_v5 = vsel %vm173_vm3, %v1321_v4, 0.0 }
 0x437   : > { %v850_v1 = vsub.f32 %v846_v30, %v849_v56 }
 0x438   : > { %523 = vrot.lane.b32.xlu1 %v1414_v2, %s1370_s30 }
 0x439   : > { %v851_v3 = vmul.f32 1.442695, %v850_v1 }
 0x43a   : > { %v300_v57 = vpop.permute.xlu0 %299 }
 0x43b   : > { %v305_v58 = vsel %vm191_vm4, %v300_v57, 0  ;;  %1324 = vpow2.f32 %v851_v3 }
 0x43c   : > { %1192 = vmatpush3.bf16.msra.mxu0 %v305_v58 }
 0x43d   : > { %1203 = vmatprep.subr.bf16.mxu0 %v1350_v0  ;;  %v1525_v6 = vpop.eup %1322 }
 0x43e   : > { %v741_v8 = vsel %vm173_vm3, %v1525_v6, 0.0 }
 0x445   : > { %635 = vrot.lane.b32.xlu0 %v1414_v2, %s1371_s2  ;;  %v1529_v10 = vpop.eup %1324 }
 0x446   : > { %v853_v12 = vsel %vm173_vm3, %v1529_v10, 0.0 }
 0x45c   : > { %630 = vadd.xlane.f32.xlu1 %v629_v5 }
 0x460   : > { %742 = vadd.xlane.f32.xlu1 %v741_v8 }
 0x463   : > { %v961_v11 = vpop.xlane.xlu1 %960 }
 0x464   : > { %v962_v13 = vsub.f32 %v958_v38, %v961_v11  ;;  %854 = vadd.xlane.f32.xlu0 %v853_v12 }
 0x466   : > { %v963_v14 = vmul.f32 1.442695, %v962_v13 }
 0x468   : > { %1326 = vpow2.f32 %v963_v14 }
 0x472   : > { %v1533_v15 = vpop.eup %1326 }
 0x473   : > { %v965_v16 = vsel %vm173_vm3, %v1533_v15, 0.0 }
 0x474   : > { %966 = vadd.xlane.f32.xlu1 %v965_v16 }
 0x47a   : > { %859 = vrot.lane.b32.xlu0 %v1414_v2, %s1372_s3 }
 0x47e   : > { %971 = vrot.lane.b32.xlu0 %v1414_v2, %s1373_s4 }
 0x485   : > { %747 = vrot.lane.b32.xlu1 %v1414_v2, %s1374_s5 }
 0x4ac   : > { %v295_v17 = vpop.xlane.xlu0 %294 }
 0x4ad   : > { %1328 = vrcp.f32 %v295_v17 }
 0x4b4   : > { %v407_v18 = vpop.xlane.xlu1 %406 }
 0x4b5   : > { %1330 = vrcp.f32 %v407_v18 }
 0x4b7   : > { %v1329_v19 = vpop.eup %1328 }
 0x4b8   : > { %v297_v20 = vmul.f32 %v1329_v19, %v1315_v46  ;;  %v524_v25 = vpop.permute.xlu1 %523 }
 0x4b9   : > { %v529_v27 = vsel %vm191_vm4, %v524_v25, 0 }
 0x4ba   : > { %v298_v21 = vpack.c.bf16 %v297_v20, %v297_v20 }
 0x4bc   : > { %1194 = vmatmul.mubr.msk.bf16.vlgmr.msra.gmra.mrb[4].mxu0 %vm173_vm3, %v298_v21  ;;  %v519_v23 = vpop.xlane.xlu0 %518 }
 0x4bd   : > { %1204 = vmatpush3.bf16.msra.mxu0 %v417_v22  ;;  %1332 = vrcp.f32 %v519_v23  ;;  %1205 = vmatprep.mubr.msk.bf16.mxu0 %vm1351_vm0, %v1350_v0 }
 0x4be   : > { %1215 = vmatprep.subr.bf16.mxu0 %v1350_v0 }
 0x4bf   : > { %v1331_v2 = vpop.eup %1330 }
 0x4c0   : > { %v409_v24 = vmul.f32 %v1331_v2, %v1511_v9  ;;  %v636_v30 = vpop.permute.xlu0 %635 }
 0x4c1   : > { %v641_v32 = vsel %vm191_vm4, %v636_v30, 0 }
 0x4c2   : > { %v410_v26 = vpack.c.bf16 %v409_v24, %v409_v24 }
 0x4c4   : > { %1206 = vmatmul.mubr.msk.bf16.vlgmr.msra.gmra.mrb[8].mxu0 %vm173_vm3, %v410_v26 }
 0x4c5   : > { %1216 = vmatpush3.bf16.msra.mxu0 %v529_v27  ;;  %1217 = vmatprep.mubr.msk.bf16.mxu0 %vm1351_vm0, %v1350_v0 }
 0x4c6   : > { %1227 = vmatprep.subr.bf16.mxu0 %v1350_v0 }
 0x4c7   : > { %v1333_v28 = vpop.eup %1332 }
 0x4c8   : > { %v521_v29 = vmul.f32 %v1333_v28, %v1515_v53 }
 0x4ca   : > { %v522_v31 = vpack.c.bf16 %v521_v29, %v521_v29 }
 0x4cc   : > { %1218 = vmatmul.mubr.msk.bf16.vlgmr.msra.gmra.mrb[12].mxu0 %vm173_vm3, %v522_v31 }
 0x4cd   : > { %1228 = vmatpush3.bf16.msra.mxu0 %v641_v32  ;;  %1229 = vmatprep.mubr.msk.bf16.mxu0 %vm1351_vm0, %v1350_v0 }
 0x4ce   : > { %1239 = vmatprep.subr.bf16.mxu0 %v1350_v0 }
 0x4e9   : > { %v631_v33 = vpop.xlane.xlu1 %630 }
 0x4ea   : > { %1334 = vrcp.f32 %v631_v33 }
 0x4ed   : > { %v743_v35 = vpop.xlane.xlu1 %742 }
 0x4ee   : > { %1336 = vrcp.f32 %v743_v35 }
 0x4f1   : > { %v855_v38 = vpop.xlane.xlu0 %854 }
 0x4f2   : > { %1338 = vrcp.f32 %v855_v38 }
 0x4f4   : > { %v1335_v34 = vpop.eup %1334 }
 0x4f5   : > { %v633_v36 = vmul.f32 %v1335_v34, %v1321_v4  ;;  %v860_v43 = vpop.permute.xlu0 %859 }
 0x4f6   : > { %v865_v46 = vsel %vm191_vm4, %v860_v43, 0 }
 0x4f7   : > { %v634_v37 = vpack.c.bf16 %v633_v36, %v633_v36 }
 0x4f8   : > { %v1337_v39 = vpop.eup %1336 }
 0x4f9   : > { %1230 = vmatmul.mubr.msk.bf16.vlgmr.msra.gmra.mrb[16].mxu0 %vm173_vm3, %v634_v37  ;;  %v745_v41 = vmul.f32 %v1337_v39, %v1525_v6  ;;  %v972_v50 = vpop.permute.xlu0 %971 }
 0x4fa   : > { %1241 = vmatprep.mubr.msk.bf16.mxu0 %vm1351_vm0, %v1350_v0  ;;  %v977_v9 = vsel %vm191_vm4, %v972_v50, 0 }
 0x4fb   : > { %v746_v45 = vpack.c.bf16 %v745_v41, %v745_v41 }
 0x4fc   : > { %v1339_v47 = vpop.eup %1338 }
 0x4fd   : > { %v857_v49 = vmul.f32 %v1339_v47, %v1529_v10 }
 0x4ff   : > { %v858_v51 = vpack.c.bf16 %v857_v49, %v857_v49 }
 0x501   : > { %v967_v40 = vpop.xlane.xlu1 %966 }
 0x502   : > { %1340 = vrcp.f32 %v967_v40 }
 0x505   : > { %v748_v42 = vpop.permute.xlu1 %747 }
 0x506   : > { %v753_v44 = vsel %vm191_vm4, %v748_v42, 0 }
 0x507   : > { %1240 = vmatpush3.bf16.msra.mxu0 %v753_v44 }
 0x508   : > { %1251 = vmatprep.subr.bf16.mxu0 %v1350_v0 }
 0x50a   : > { %1242 = vmatmul.mubr.msk.bf16.vlgmr.msra.gmra.mrb[20].mxu0 %vm173_vm3, %v746_v45 }
 0x50b   : > { %1252 = vmatpush3.bf16.msra.mxu0 %v865_v46  ;;  %1253 = vmatprep.mubr.msk.bf16.mxu0 %vm1351_vm0, %v1350_v0 }
 0x50c   : > { %1263 = vmatprep.subr.bf16.mxu0 %v1350_v0  ;;  %v1341_v52 = vpop.eup %1340 }
 0x50d   : > { %v969_v53 = vmul.f32 %v1341_v52, %v1533_v15 }
 0x50f   : > { %v970_v54 = vpack.c.bf16 %v969_v53, %v969_v53 }
 0x512   : > { %1254 = vmatmul.mubr.msk.bf16.vlgmr.msra.gmra.mrb[24].mxu0 %vm173_vm3, %v858_v51 }
 0x513   : > { %1264 = vmatpush3.bf16.msra.mxu0 %v977_v9  ;;  %1265 = vmatprep.mubr.msk.bf16.mxu0 %vm1351_vm0, %v1350_v0 }
 0x51a   : > { %1266 = vmatmul.mubr.msk.bf16.vlgmr.msra.gmra.mrb[28].mxu0 %vm173_vm3, %v970_v54 }
 0x58f   : > { %v341_v55 = vpop.f32.mrb[4].mxu0 }
 0x590   : > { %1020 = vrot.lane.b32.xlu1 %v341_v55, %s1375_s9  ;;  %v1195_v56 = vpop.f32.mrb[5].mxu0 }
 0x591   : > { %v344_v57 = vpop.f32.mrb[6].mxu0 }
 0x592   : > { %v1196_v58 = vpop.f32.mrb[7].mxu0 }
 0x597   : > { %v453_v59 = vpop.f32.mrb[8].mxu0 }
 0x598   : > { %1024 = vrot.lane.b32.xlu0 %v453_v59, %s1376_s10  ;;  %v1207_v60 = vpop.f32.mrb[9].mxu0 }
 0x599   : > { %v456_v61 = vpop.f32.mrb[10].mxu0 }
 0x59a   : > { %v1208_v62 = vpop.f32.mrb[11].mxu0 }
 0x59f   : > { %v565_v63 = vpop.f32.mrb[12].mxu0 }
 0x5a0   : > { %1028 = vrot.lane.b32.xlu1 %v565_v63, %s1377_s11  ;;  %v1219_v0 = vpop.f32.mrb[13].mxu0 }
 0x5a1   : > { %v568_v1 = vpop.f32.mrb[14].mxu0 }
 0x5a2   : > { %v1220_v3 = vpop.f32.mrb[15].mxu0 }
 0x5cc   : > { %v677_v4 = vpop.f32.mrb[16].mxu0 }
 0x5cd   : > { %1032 = vrot.lane.b32.xlu0 %v677_v4, %s1378_s12  ;;  %v1231_v5 = vpop.f32.mrb[17].mxu0 }
 0x5ce   : > { %v680_v6 = vpop.f32.mrb[18].mxu0 }
 0x5cf   : > { %v1232_v7 = vpop.f32.mrb[19].mxu0 }
 0x5dd   : > { %v789_v8 = vpop.f32.mrb[20].mxu0 }
 0x5de   : > { %1036 = vrot.lane.b32.xlu1 %v789_v8, %s1379_s13  ;;  %v1243_v10 = vpop.f32.mrb[21].mxu0 }
 0x5df   : > { %v792_v11 = vpop.f32.mrb[22].mxu0 }
 0x5e0   : > { %v1244_v12 = vpop.f32.mrb[23].mxu0 }
 0x5e5   : > { %v901_v13 = vpop.f32.mrb[24].mxu0 }
 0x5e6   : > { %1040 = vrot.lane.b32.xlu0 %v901_v13, %s1380_s14  ;;  %v1255_v14 = vpop.f32.mrb[25].mxu0 }
 0x5e7   : > { %v904_v15 = vpop.f32.mrb[26].mxu0 }
 0x5e8   : > { %v1256_v16 = vpop.f32.mrb[27].mxu0 }
 0x5ed   : > { %v1013_v17 = vpop.f32.mrb[28].mxu0 }
 0x5ee   : > { %1044 = vrot.lane.b32.xlu1 %v1013_v17, %s1381_s15  ;;  %v1267_v18 = vpop.f32.mrb[29].mxu0 }
 0x5ef   : > { %v1016_v19 = vpop.f32.mrb[30].mxu0 }
 0x5f0   : > { %v1268_v20 = vpop.f32.mrb[31].mxu0 }
 0x602   : > { %v1021_v21 = vpop.permute.xlu1 %1020 }
 0x603   : > { %v1047_v24 = vsel %vm124_vm1, %v1482_v48, %v1021_v21 }
 0x60a   : > { %v1025_v22 = vpop.permute.xlu0 %1024 }
 0x60b   : > { %v1048_v25 = vsel %vm173_vm3, %v1047_v24, %v1025_v22 }
 0x612   : > { %v1029_v23 = vpop.permute.xlu1 %1028 }
 0x613   : > { %v1050_v27 = vsel %vm1049_vm5, %v1048_v25, %v1029_v23 }
 0x63f   : > { %v1033_v2 = vpop.permute.xlu0 %1032 }
 0x640   : > { %v1052_v29 = vsel %vm1051_vm6, %v1050_v27, %v1033_v2 }
 0x650   : > { %v1037_v26 = vpop.permute.xlu1 %1036 }
 0x651   : > { %v1054_v30 = vsel %vm1053_vm7, %v1052_v29, %v1037_v26 }
 0x658   : > { %v1041_v28 = vpop.permute.xlu0 %1040 }
 0x659   : > { %v1056_v31 = vsel %vm1055_vm8, %v1054_v30, %v1041_v28 }
 0x660   : > { %v1045_v32 = vpop.permute.xlu1 %1044 }
 0x661   : > { %v1058_v48 = vsel %vm1057_vm9, %v1056_v31, %v1045_v32 }
 0x662   : > { %v1059_v33 = vpack.c.bf16 %v1058_v48, %v1058_v48 }
 0x664   : > { %1061 = vst.msk [vmem:[%s111_s18] sm:$0xf] %vm1060_vm10, %v1059_v33 }
 0x665 PF: > { %s11_s6 = sadd.s32 1, %s1348_s6  }
 0x666   : > { %p8_p4 = scmp.ge.s32.totalorder %s11_s6, 4  }
 0x668   :  { %10 = sbr.rel (!%p8_p4) target bundleno = 1 (0x1), region = 54 }

// kernel: forward.16
= control target key start
LH: loop header
LB: loop body
LE: loop exit
PB: predicated region body
PF: predicated region fallthrough
CT: control target
= control target key end

     0   :  { %s666_s21 = smov 0   ;;  %s668_s22 = smov 0   ;;  %s732_s0 = inlined_call_operand.vmem [shape: bf16[16,64], index: 0, kind: input, shape index: {}]   ;;  %s733_s1 = inlined_call_operand.vmem [shape: bf16[64,32], index: 1, kind: input, shape index: {}]   ;;  %s734_s2 = inlined_call_operand.vmem [shape: f32[1,32], index: 2, kind: input, shape index: {}]   ;;  %s735_s3 = inlined_call_operand.vmem [shape: bf16[16,32], index: 3, kind: input, shape index: {}]   ;;  %s736_s4 = inlined_call_operand.vmem [shape: f32[1,32], index: 4, kind: input, shape index: {}]   ;;  %s737_s5 = inlined_call_operand.vmem [shape: f32[1,32], index: 5, kind: input, shape index: {}]   ;;  %s738_s6 = inlined_call_operand.vmem [shape: bf16[16,32], index: 6, kind: output, shape index: {}]  }
   0x1   :  { %s670_s23 = smov 0  }
   0x2 LB: > { %s28_s24 = sadd.s32 1, %s623_s22  ;;  %p542_p0 = scmp.ge.s32.totalorder %s627_s23, 1  ;;  %s627_s23 = sphi %s670_s23, %s16_s23   ;;  %s623_s22 = sphi %s668_s22, %s740_s22   ;;  %s619_s21 = sphi %s666_s21, %s739_s21  }
   0x3   : > { %p30_p1 = scmp.ge.s32.totalorder %s28_s24, 2  ;;  %p248_p2 = scmp.lt.s32.totalorder %s627_s23, 3 }
   0x5   : > { %s742_s24 = smov (%p30_p1, %s28_s24), 0  ;;  %p249_p3 = pnand %p542_p0, %p248_p2 }
   0x6   : > { %v599_v0 = vld [vmem:[%s733_s1] sm:$0xff] (!%p249_p3)   ;;  %v629_v1 = vmov (!%p249_p3), 0.0   ;;  %v600_v2 = vld [vmem:[%s733_s1 + $0x8] sm:$0xff] (!%p249_p3)   ;;  %vm630_vm0 = vmmov (!%p249_p3), 0   ;;  %p288_p4 = scmp.lt.s32.totalorder (!%p249_p3), %s619_s21, 1  ;;  %vm314_vm1 = vcmask (!%p249_p3), 261120  }
   0x7   : > { %252 = sbr.rel (%p249_p3) target bundleno = 563 (0x233), region = 44  ;;  %561 = vmatprep.subr.bf16.mxu0 (!%p249_p3), %v629_v1  ;;  %569 = vmatprep.mubr.msk.bf16.mxu0 (!%p249_p3), %vm630_vm0, %v629_v1  ;;  %315 = vst.msk [vmem:[#allocation2] sm:$0xff] (!%p249_p3), %vm314_vm1, %v629_v1  ;;  %v601_v3 = vld [vmem:[%s733_s1 + $0x10] sm:$0xff] (!%p249_p3)   ;;  %v602_v4 = vld [vmem:[%s733_s1 + $0x18] sm:$0xff] (!%p249_p3)   ;;  %vm350_vm2 = vcmask (!%p249_p3), 523264   ;;  %vm443_vm3 = vcmask (!%p249_p3), 257024  }
   0x8   : > { %562 = vmatpush3.bf16.msra.mxu0 (!%p249_p3), %v599_v0  ;;  %v551_v13 = vld [vmem:[%s734_s2] ss:$0 sm:$0xff] (!%p249_p3) }
   0x9   : > { %563 = vmatprep.subr.bf16.mxu0 (!%p249_p3), %v629_v1  ;;  %v552_v27 = vld [vmem:[%s736_s4] ss:$0 sm:$0xff] (!%p249_p3) }
   0xa   : > { %v553_v30 = vld [vmem:[%s737_s5] ss:$0 sm:$0xff] (!%p249_p3) }
   0xc   : > { %564 = vmatpush3.bf16.msra.mxu0 (!%p249_p3), %v600_v2 }
   0xd   : > { %565 = vmatprep.subr.bf16.mxu0 (!%p249_p3), %v629_v1 }
   0xe   : > { %s744_s21 = smov (!%p288_p4, %s619_s21), 1  ;;  %v316_v6 = vld [vmem:[#allocation2] sm:$0xff] }
   0xf   : > { %s694_s7 = sshll.u32 %s744_s21, 2 }
  0x10   : > { %566 = vmatpush3.bf16.msra.mxu0 %v601_v3  ;;  %s294_s12 = scalar_lea.vmem %s732_s0, %s694_s7  ;;  %s304_s15 = scalar_lea.vmem %s735_s3, %s694_s7 }
  0x11   : > { %567 = vmatprep.subr.bf16.mxu0 %v629_v1  ;;  %v317_v5 = vld [vmem:[%s294_s12] sm:$0xf]  ;;  %s308_s27 = scalar_lea.vmem %s738_s6, %s694_s7 }
  0x12   : > { %v409_v12 = vld [vmem:[%s304_s15] sm:$0xf] }
  0x13   : > { %v410_v14 = vunpack.c.l.bf16 %v409_v12 }
  0x14   : > { %568 = vmatpush3.bf16.msra.mxu0 %v602_v4 }
  0x17   : > { %570 = vmatmul.mubr.msk.bf16.vlgmr.msra.gmra.mrb[0].mxu0 %vm350_vm2, %v317_v5 }
  0xea   : > { %v388_v7 = vpop.f32.mrb[0].mxu0 }
  0xeb   : > { %v394_v8 = vadd.f32 %v388_v7, %v316_v6  ;;  %v571_v9 = vpop.f32.mrb[1].mxu0 }
  0xec   : > { %v391_v10 = vpop.f32.mrb[2].mxu0 }
  0xed   : > { %396 = vst.msk [vmem:[#allocation2] sm:$0xff] %vm314_vm1, %v394_v8  ;;  %v572_v11 = vpop.f32.mrb[3].mxu0 }
  0xf4   : > { %v400_v15 = vld [vmem:[#allocation2] sm:$0xff] }
  0xf5   : > { %v408_v16 = vadd.f32 %v551_v13, %v400_v15 }
  0xf7   : > { %v411_v17 = vadd.f32 %v410_v14, %v408_v16 }
  0xf9   : > { %v412_v18 = vsel %vm314_vm1, %v411_v17, 0.0 }
  0xfa   : > { %413 = vadd.xlane.f32.xlu0 %v412_v18 }
 0x187   : > { %v414_v19 = vpop.xlane.xlu0 %413 }
 0x188   : > { %v416_v20 = vmul.f32 0.03125, %v414_v19 }
 0x18a   : > { %v417_v21 = vsub.f32 %v411_v17, %v416_v20 }
 0x18c   : > { %v418_v22 = vmul.f32 %v417_v21, %v417_v21  ;;  %v432_v28 = vmul.f32 %v552_v27, %v417_v21 }
 0x18e   : > { %v419_v23 = vsel %vm314_vm1, %v418_v22, 0.0 }
 0x18f   : > { %420 = vadd.xlane.f32.xlu0 %v419_v23 }
 0x21c   : > { %v421_v24 = vpop.xlane.xlu0 %420 }
 0x21d   : > { %v422_v25 = vmul.f32 0.032258064, %v421_v24 }
 0x21f   : > { %v423_v26 = vadd.f32 1e-05, %v422_v25 }
 0x221   : > { %603 = vrsqrt.f32 %v423_v26 }
 0x22b   : > { %v604_v29 = vpop.eup %603 }
 0x22c   : > { %v433_v31 = vmul.f32 %v604_v29, %v432_v28 }
 0x22e   : > { %v441_v32 = vadd.f32 %v553_v30, %v433_v31 }
 0x230   : > { %v442_v33 = vpack.c.bf16 %v441_v32, %v441_v32 }
 0x232   : > { %444 = vst.msk [vmem:[%s308_s27] sm:$0xf] %vm443_vm3, %v442_v33 }
 0x233 PF: > { %s16_s23 = sadd.s32 1, %s627_s23   ;;  %s739_s21 = smov %s623_s22 }
 0x234   : > { %p13_p5 = scmp.ge.s32.totalorder %s16_s23, 4   ;;  %s740_s22 = smov %s742_s24 }
 0x236   :  { %15 = sbr.rel (!%p13_p5) target bundleno = 2 (0x2), region = 88 }

// kernel: forward.22
= control target key start
LH: loop header
LB: loop body
LE: loop exit
PB: predicated region body
PF: predicated region fallthrough
CT: control target
= control target key end

     0   :  { %s304_s12 = smov 0   ;;  %s327_s0 = inlined_call_operand.vmem [shape: bf16[16,32], index: 0, kind: input, shape index: {}]   ;;  %s328_s1 = inlined_call_operand.vmem [shape: f32[1,32], index: 1, kind: input, shape index: {}]   ;;  %s329_s2 = inlined_call_operand.vmem [shape: f32[1,32], index: 2, kind: input, shape index: {}]   ;;  %s330_s3 = inlined_call_operand.vmem [shape: bf16[16,32], index: 3, kind: output, shape index: {}]  }
   0x1 LB: > { %s255_s13 = sadd.s32 4294967295, %s282_s12   ;;  %p259_p0 = scmp.ge.s32.totalorder %s282_s12, 1  ;;  %s282_s12 = sphi %s304_s12, %s13_s12  }
   0x2   : > { %p136_p1 = scmp.lt.s32.totalorder %s282_s12, 3 }
   0x4   : > { %p137_p2 = pnand %p259_p0, %p136_p1 }
   0x5   : > { %p158_p3 = scmp.lt.s32.totalorder (!%p137_p2), %s255_s13, 1  ;;  %vm168_vm0 = vcmask (!%p137_p2), 261120   ;;  %v262_v11 = vld [vmem:[%s328_s1] ss:$0 sm:$0xff] (!%p137_p2)  ;;  %vm200_vm1 = vcmask (!%p137_p2), 257024  }
   0x6   : > { %140 = sbr.rel (%p137_p2) target bundleno = 333 (0x14d), region = 32  ;;  %v263_v14 = vld [vmem:[%s329_s2] ss:$0 sm:$0xff] (!%p137_p2) }
   0xd   : > { %s332_s13 = smov (!%p158_p3, %s255_s13), 1 }
   0xe   : > { %s260_s14 = sshll.u32 %s332_s13, 2 }
   0xf   : > { %s161_s17 = scalar_lea.vmem %s327_s0, %s260_s14  ;;  %s165_s24 = scalar_lea.vmem %s330_s3, %s260_s14 }
  0x10   : > { %v166_v0 = vld [vmem:[%s161_s17] sm:$0xf] }
  0x11   : > { %v167_v1 = vunpack.c.l.bf16 %v166_v0 }
  0x13   : > { %v169_v2 = vsel %vm168_vm0, %v167_v1, 0.0 }
  0x14   : > { %170 = vadd.xlane.f32.xlu0 %v169_v2 }
  0xa1   : > { %v171_v3 = vpop.xlane.xlu0 %170 }
  0xa2   : > { %v173_v4 = vmul.f32 0.03125, %v171_v3 }
  0xa4   : > { %v174_v5 = vsub.f32 %v167_v1, %v173_v4 }
  0xa6   : > { %v175_v6 = vmul.f32 %v174_v5, %v174_v5  ;;  %v189_v12 = vmul.f32 %v262_v11, %v174_v5 }
  0xa8   : > { %v176_v7 = vsel %vm168_vm0, %v175_v6, 0.0 }
  0xa9   : > { %177 = vadd.xlane.f32.xlu0 %v176_v7 }
 0x136   : > { %v178_v8 = vpop.xlane.xlu0 %177 }
 0x137   : > { %v179_v9 = vmul.f32 0.032258064, %v178_v8 }
 0x139   : > { %v180_v10 = vadd.f32 1e-05, %v179_v9 }
 0x13b   : > { %274 = vrsqrt.f32 %v180_v10 }
 0x145   : > { %v275_v13 = vpop.eup %274 }
 0x146   : > { %v190_v15 = vmul.f32 %v275_v13, %v189_v12 }
 0x148   : > { %v198_v16 = vadd.f32 %v263_v14, %v190_v15 }
 0x14a   : > { %v199_v17 = vpack.c.bf16 %v198_v16, %v198_v16 }
 0x14c   : > { %201 = vst.msk [vmem:[%s165_s24] sm:$0xf] %vm200_vm1, %v199_v17 }
 0x14d PF: > { %s13_s12 = sadd.s32 1, %s282_s12  }
 0x14e   : > { %p10_p4 = scmp.ge.s32.totalorder %s13_s12, 4  }
 0x150   :  { %12 = sbr.rel (!%p10_p4) target bundleno = 1 (0x1), region = 62 }

// kernel: forward.23
= control target key start
LH: loop header
LB: loop body
LE: loop exit
PB: predicated region body
PF: predicated region fallthrough
CT: control target
= control target key end

     0   :  { %8 = vsyncpa [#allocation4], 0  ;;  %s763_s0 = inlined_call_operand.vmem [shape: bf16[16,32], index: 0, kind: input, shape index: {}]   ;;  %s764_s1 = inlined_call_operand.vmem [shape: bf16[32,64], index: 1, kind: input, shape index: {}]   ;;  %s765_s2 = inlined_call_operand.vmem [shape: f32[1,64], index: 2, kind: input, shape index: {}]   ;;  %s766_s3 = inlined_call_operand.hbm [shape: f32[16,64], index: 3, kind: output, shape index: {}]  }
   0x1   :  { %10 = vsyncpa [#allocation4 + $0x1], 0  ;;  %s639_s12 = smov 0   ;;  %s641_s13 = smov 0  }
   0x2   :  { %s643_s14 = smov 0   ;;  %s645_s15 = smov 0  }
   0x3   :  { %s647_s16 = smov 0   ;;  %s649_s17 = smov 0  }
   0x4 LB: > { %s449_s18 = sadd.s32 4294967295, %s614_s17   ;;  %s450_s19 = sadd.s32 4294967294, %s614_s17   ;;  %s614_s17 = sphi %s649_s17, %s16_s17   ;;  %s610_s16 = sphi %s647_s16, %s773_s16   ;;  %s606_s15 = sphi %s645_s15, %s772_s15   ;;  %s602_s14 = sphi %s643_s14, %s771_s14   ;;  %s598_s13 = sphi %s641_s13, %s770_s13   ;;  %s594_s12 = sphi %s639_s12, %s769_s12  }
   0x5   : > { %s35_s20 = sadd.s32 1, %s610_s16  ;;  %s126_s21 = sadd.s32 1, %s602_s14 }
   0x6   : > { %p37_p0 = scmp.ge.s32.totalorder %s35_s20, 2  ;;  %p136_p1 = scmp.ne.s32.totalorder %s602_s14, %s598_s13 }
   0x7   : > { %p137_p2 = scmp.eq.s32.totalorder %s449_s18, 1  ;;  %p142_p3 = scmp.ne.s32.totalorder %s598_s13, %s594_s12 }
   0x8   : > { %s775_s20 = smov (%p37_p0, %s35_s20), 0  ;;  %p143_p5 = scmp.eq.s32.totalorder %s450_s19, 1 }
   0x9   : > { %p679_p4 = por %p137_p2, %p136_p1  ;;  %s121_s23 = ssub.s32 %s610_s16, %s775_s20 }
   0xa   : > { %p455_p6 = scmp.ge.s32.totalorder %s614_s17, 1  ;;  %p124_p7 = scmp.eq.s32.totalorder %s121_s23, 0 }
   0xb   : > { %p686_p8 = por %p143_p5, %p142_p3  ;;  %p189_p9 = scmp.lt.s32.totalorder %s614_s17, 3 }
   0xc   : > { %s692_s25 = scalar_select %p124_p7, %s602_s14, %s126_s21  }
   0xd   : > { %p190_p10 = pnand %p455_p6, %p189_p9 }
   0xe   : > { %v534_v0 = vld [vmem:[%s764_s1] sm:$0xff] (!%p190_p10)   ;;  %v616_v1 = vmov (!%p190_p10), 0.0   ;;  %v535_v2 = vld [vmem:[%s764_s1 + $0x8] sm:$0xff] (!%p190_p10)   ;;  %vm617_vm0 = vmmov (!%p190_p10), 0   ;;  %p226_p11 = scmp.lt.s32.totalorder (!%p190_p10), %s606_s15, 1  ;;  %vm250_vm1 = vcmask (!%p190_p10), 523264  }
   0xf   : > { %193 = sbr.rel (%p190_p10) target bundleno = 265 (0x109), region = 32  ;;  %469 = vmatprep.subr.bf16.mxu0 (!%p190_p10), %v616_v1  ;;  %473 = vmatprep.mubr.msk.bf16.mxu0 (!%p190_p10), %vm617_vm0, %v616_v1  ;;  %251 = vst.msk [vmem:[#allocation2] sm:$0xff] (!%p190_p10), %vm250_vm1, %v616_v1  ;;  %vm270_vm2 = vcmask (!%p190_p10), 261120   ;;  %s223_s8 = sand.u32 (!%p190_p10), 1, %s598_s13   ;;  %v461_v10 = vld [vmem:[%s765_s2] ss:$0 sm:$0xff] (!%p190_p10) }
  0x10   : > { %470 = vmatpush3.bf16.msra.mxu0 (!%p190_p10), %v534_v0  ;;  %s456_s9 = sshll.u32 (!%p190_p10), %s223_s8, 3  ;;  %s463_s18 = sshll.u32 (!%p190_p10), %s606_s15, 7 }
  0x11   : > { %471 = vmatprep.subr.bf16.mxu0 (!%p190_p10), %v616_v1  ;;  %s225_s19 = scalar_lea.vmem (!%p190_p10), [#allocation3], %s456_s9  ;;  %s715_s27 = scalar_lea.hbm (!%p190_p10), %s766_s3, %s463_s18 }
  0x12   : > { %s345_s21 = sshll.u32 (!%p190_p10), %s225_s19, 4  ;;  %s331_s28 = scalar_lea.sflag (!%p190_p10), [#allocation4], %s223_s8  ;;  %s717_s21 = int_to_ptr.vmem [resolvable:$true] %s345_s21 }
  0x13   : > { %s536_s29 = scalar_lea.vmem (!%p190_p10), %s717_s21, 128 }
  0x14   : > { %472 = vmatpush3.bf16.msra.mxu0 (!%p190_p10), %v535_v2  ;;  %p537_p12 = scmp.ne.s32.totalorder (!%p190_p10), %s717_s21, %s536_s29 }
  0x16   : > { %s227_s30 = scalar_select %p226_p11, %s606_s15, 1  ;;  %v252_v4 = vld [vmem:[#allocation2] sm:$0xff] }
  0x17   : > { %p538_p13 = pnand %p537_p12, %p679_p4  ;;  %s618_s15 = smov [#allocation3]  }
  0x18   : > { %s457_s4 = sshll.u32 %s227_s30, 2  ;;  %s540_s30 = sshll.u32 %s618_s15, 4  ;;  %s541_s30 = int_to_ptr.vmem [resolvable:$false] %s540_s30 }
  0x19   : > { %s232_s7 = scalar_lea.vmem %s763_s0, %s457_s4  ;;  %p539_p0 = pneg %p538_p13 }
  0x1a   : > { %v253_v3 = vld [vmem:[%s232_s7] sm:$0xf]  ;;  %s542_s4 = scalar_lea.vmem %s541_s30, 256  ;;  %p543_p1 = scmp.lt.s32.totalorder %s717_s21, %s541_s30 }
  0x1b   : > { %474 = vmatmul.mubr.msk.bf16.vlgmr.msra.gmra.mrb[0].mxu0 %vm270_vm2, %v253_v3  ;;  %p544_p2 = scmp.lt.s32.totalorder %s542_s4, %s536_s29 }
  0x1d   : > { %p545_p3 = por %p544_p2, %p543_p1 }
  0x1f   : > { %p546_p5 = pnand %p545_p3, %p539_p0 }
  0xee   : > { %v308_v5 = vpop.f32.mrb[0].mxu0 }
  0xef   : > { %v314_v6 = vadd.f32 %v308_v5, %v252_v4  ;;  %v475_v7 = vpop.f32.mrb[1].mxu0 }
  0xf0   : > { %v311_v8 = vpop.f32.mrb[2].mxu0 }
  0xf1   : > { %316 = vst.msk [vmem:[#allocation2] sm:$0xff] %vm250_vm1, %v314_v6  ;;  %v476_v9 = vpop.f32.mrb[3].mxu0 }
  0xf8   : > { %v320_v11 = vld [vmem:[#allocation2] sm:$0xff] }
  0xf9   : > { %v328_v12 = vadd.f32 %v461_v10, %v320_v11 }
  0xfb   : > { %329 = vst.msk [vmem:[%s225_s19] sm:$0xff] %vm250_vm1, %v328_v12 }
  0xfc   : > { %549 = shalt.err (!%p546_p5)
}
  0xfd   : > { %s550_s5 = scalar_lea.hbm %s715_s27, 128  ;;  %s554_s8 = scalar_lea.hbm %s766_s3, 256 }
  0xfe   : > { %p551_p6 = scmp.ne.s32.totalorder %s715_s27, %s550_s5  ;;  %p555_p10 = scmp.lt.u32.totalorder %s715_s27, %s766_s3 }
  0xff   : > { %p556_p11 = scmp.lt.u32.totalorder %s554_s8, %s550_s5  ;;  %p558_p13 = scmp.lt.u32.totalorder %s550_s5, %s715_s27 }
 0x100   : > { %p552_p7 = pnand %p551_p6, %p679_p4 }
 0x101   : > { %p557_p12 = por %p556_p11, %p555_p10 }
 0x102   : > { %p553_p9 = pneg %p552_p7 }
 0x103   : > { %p559_p0 = por %p558_p13, %p557_p12 }
 0x105   : > { %p560_p1 = pnand %p559_p0, %p553_p9 }
 0x107   : > { %563 = shalt.err (!%p560_p1)
}
 0x108   : > { %477 = dma.vmem_to_hbm [thread:$0]  (%p679_p4), %s717_s21, 128, %s715_s27, %s331_s28  }
 0x109 PF: > { %p483_p2 = scmp.ge.s32.totalorder %s614_s17, 2  ;;  %s357_s11 = sand.u32 1, %s594_s12  }
 0x10a   : > { %s358_s18 = scalar_lea.sflag [#allocation4], %s357_s11 }
 0x10b   : > { %p480_p3 = pnand %p483_p2, %p686_p8 }
 0x10d   : > { %589 = dma.done.wait (!%p480_p3), %s358_s18, 128  }
 0x10e   : > { %591 = vsyncadd (!%p480_p3), %s358_s18, 4294967168  ;;  %s16_s17 = sadd.s32 1, %s614_s17   ;;  %s769_s12 = smov %s598_s13 }
 0x10f   : > { %p13_p5 = scmp.ge.s32.totalorder %s16_s17, 4   ;;  %s770_s13 = smov %s602_s14 }
 0x110   : > { %s771_s14 = smov %s692_s25  ;;  %s772_s15 = smov %s610_s16 }
 0x111   : > { %s773_s16 = smov %s775_s20  ;;  %15 = sbr.rel (!%p13_p5) target bundleno = 4 (0x4), region = 81 }
 0x118   :  { %363 = vsyncpa [#allocation4], 1 }
 0x119   :  { %365 = vsyncpa [#allocation4 + $0x1], 1 }

</bundles_post_ra>
